<compile_context>
chip_gen: v6e
topology: v6e:2x2x1
jax: 0.10.0
libtpu: 0.0.40
codegen_flags: <defaults>
</compile_context>

<pallas_src>
import functools

import jax
import jax.numpy as jnp
import numpy as np
from jax.experimental import pallas as pl
from jax.experimental.pallas import tpu as pltpu


# ---------------------------------------------------------------------------
# Kernel: one (batch, H-tile) block of  cat([x, relu(conv3x3(x)+b)], channel)
# ---------------------------------------------------------------------------
def _dense_layer_kernel(x_ref, top_ref, bot_ref, w_ref, b_ref, o_ref,
                        *, th, wd, cin, cout):
    mid = x_ref[0]                        # (TH,  W+2, Cin)  W-padded rows of tile
    top = top_ref[0]                      # (1,   W+2, Cin)  row above the tile
    bot = bot_ref[0]                      # (1,   W+2, Cin)  row below the tile
    # Haloed tile = padded rows [i*TH - 1, i*TH + TH + 1)  (concat on major axis).
    xt = jnp.concatenate([top, mid, bot], axis=0)      # (TH+2, W+2, Cin)

    rows = th * wd
    acc = jnp.zeros((rows, cout), dtype=jnp.float32)
    # 3x3 conv as 9 shifted accumulating MXU matmuls (in-VMEM "im2col", never
    # HBM).  Static Python loop -> fully unrolled, visible to the scheduler.
    for dy in range(3):
        slab = xt[dy:dy + th]             # (TH, W+2, Cin): outer-dim slice, cheap
        for dx in range(3):
            sl = slab[:, dx:dx + wd, :].reshape(rows, cin)
            acc = acc + jnp.dot(sl, w_ref[dy * 3 + dx],
                                preferred_element_type=jnp.float32)
    y = jnp.maximum(acc + b_ref[...], 0.0)             # fused bias + ReLU

    xc = mid[:, 1:1 + wd, :].reshape(rows, cin)         # identity half of the cat
    tile = jnp.concatenate([xc, y], axis=-1)            # (rows, Cin+Cout)
    # Store lane-dense: spatial (multiple of 128) on lanes, channels on sublanes.
    o_ref[0] = jnp.transpose(tile, (1, 0))              # (Ctot, TH*W)


# ---------------------------------------------------------------------------
# Wrapper
# ---------------------------------------------------------------------------
def _pick_block_h(h, w, target_rows=2048):
    """Largest H-tile dividing H with TH*W a multiple of 128, ~target rows/tile.

    ~2048 rows/tile keeps per-step overhead negligible while the live VMEM
    footprint (in + out blocks double-buffered + intermediates) stays well
    under the default scoped-VMEM limit even for Cin/Cout ~ 64.
    """
    cap = max(1, min(h, target_rows // max(w, 1)))
    for th in range(cap, 0, -1):
        if h % th == 0 and (th * w) % 128 == 0:
            return th
    return h  # single tile along H (block == full extent is always legal)


def dense_layer_forward(x_nchw, w_oihw, b, *, block_h=None):
    """out = cat([x, relu(conv3x3(x) + b)], dim=1), NCHW in / NCHW out."""
    n, cin, h, wd = x_nchw.shape
    cout = w_oihw.shape[0]
    ctot = cin + cout

    th = _pick_block_h(h, wd) if block_h is None else block_h
    if h % th != 0:
        raise ValueError("block_h must divide H")
    n_th = h // th
    if n_th > 1 and (th * wd) % 128 != 0:
        raise ValueError("block_h * W must be a multiple of 128 when tiling H")

    # Layout prep (pure XLA plumbing): NHWC + width padding, plus two 1-row
    # halo side-arrays so the kernel's H tiles never overlap in the BlockSpec.
    x_nhwc = jnp.transpose(x_nchw, (0, 2, 3, 1)).astype(jnp.float32)
    x_w = jnp.pad(x_nhwc, ((0, 0), (0, 0), (1, 1), (0, 0)))      # (N, H,   W+2, C)
    x_hw = jnp.pad(x_w, ((0, 0), (1, 1), (0, 0), (0, 0)))        # (N, H+2, W+2, C)
    halo_top = x_hw[:, 0:h:th]                 # row i*TH - 1  -> (N, n_th, W+2, C)
    halo_bot = x_hw[:, th + 1:h + 2:th]        # row i*TH + TH -> (N, n_th, W+2, C)

    # Conv weight (Cout, Cin, 3, 3) -> (9, Cin, Cout), tap-major (dy*3+dx).
    w9 = jnp.transpose(w_oihw, (2, 3, 1, 0)).reshape(9, cin, cout).astype(jnp.float32)
    b_row = b.reshape(1, cout).astype(jnp.float32)

    kern = functools.partial(_dense_layer_kernel, th=th, wd=wd, cin=cin, cout=cout)

    flops = 2 * n * h * wd * (9 * cin) * cout
    bytes_accessed = 4 * (x_w.size + halo_top.size + halo_bot.size
                          + w9.size + b_row.size + n * ctot * h * wd)

    out_flat = pl.pallas_call(
        kern,
        grid=(n, n_th),
        in_specs=[
            pl.BlockSpec((1, th, wd + 2, cin), lambda nb, ib: (nb, ib, 0, 0)),
            pl.BlockSpec((1, 1, wd + 2, cin), lambda nb, ib: (nb, ib, 0, 0)),
            pl.BlockSpec((1, 1, wd + 2, cin), lambda nb, ib: (nb, ib, 0, 0)),
            pl.BlockSpec((9, cin, cout), lambda nb, ib: (0, 0, 0)),
            pl.BlockSpec((1, cout), lambda nb, ib: (0, 0)),
        ],
        out_specs=pl.BlockSpec((1, ctot, th * wd), lambda nb, ib: (nb, 0, ib)),
        out_shape=jax.ShapeDtypeStruct((n, ctot, h * wd), jnp.float32),
        compiler_params=pltpu.CompilerParams(
            dimension_semantics=("parallel", "parallel")),
        cost_estimate=pl.CostEstimate(flops=flops, transcendentals=0,
                                      bytes_accessed=bytes_accessed),
    )(x_w, halo_top, halo_bot, w9, b_row)

    # (N, Ctot, H*W) -> (N, Ctot, H, W): metadata-only reshape, no data movement.
    return out_flat.reshape(n, ctot, h, wd)


# ---------------------------------------------------------------------------
# Pure-JAX reference (for correctness check)
# ---------------------------------------------------------------------------
def reference(x, w, b):
    y = jax.lax.conv_general_dilated(
        x.astype(jnp.float32), w.astype(jnp.float32),
        window_strides=(1, 1), padding=((1, 1), (1, 1)),
        dimension_numbers=("NCHW", "OIHW", "NCHW"))
    y = jnp.maximum(y + b.reshape(1, -1, 1, 1), 0.0)
    return jnp.concatenate([x.astype(jnp.float32), y], axis=1)


if __name__ == "__main__":
    key = jax.random.PRNGKey(0)
    kx, kw, kb = jax.random.split(key, 3)
    N, Cin, H, W = 2, 4, 16, 16
    Cout = 4

    x = jax.random.normal(kx, (N, Cin, H, W), dtype=jnp.float32)
    wgt = (0.2 * jax.random.normal(kw, (Cout, Cin, 3, 3))).astype(jnp.float32)
    bias = (0.1 * jax.random.normal(kb, (Cout,))).astype(jnp.float32)

    # block_h=8 -> grid (2, 2): exercises the multi-tile + halo path at toy
    # sizes (the default heuristic picks larger tiles for realistic H, W).
    fwd = jax.jit(functools.partial(dense_layer_forward, block_h=8))
    out = jax.block_until_ready(fwd(x, wgt, bias))
    ref = reference(x, wgt, bias)
    assert out.shape == (N, Cin + Cout, H, W)
    np.testing.assert_allclose(np.asarray(out), np.asarray(ref), rtol=1e-4, atol=1e-4)

    # Also exercise the default (heuristic) tiling path: single H tile here.
    out2 = jax.block_until_ready(jax.jit(dense_layer_forward)(x, wgt, bias))
    np.testing.assert_allclose(np.asarray(out2), np.asarray(ref), rtol=1e-4, atol=1e-4)

    print("KERNEL_OK")
</pallas_src>

<mosaic_0001>
module attributes {stable_mosaic.version = 11 : i64} {
  func.func @_dense_layer_kernel(%arg0: i32, %arg1: i32, %arg2: memref<1x8x18x4xf32, #tpu.memory_space<vmem>>, %arg3: memref<1x1x18x4xf32, #tpu.memory_space<vmem>>, %arg4: memref<1x1x18x4xf32, #tpu.memory_space<vmem>>, %arg5: memref<9x4x4xf32, #tpu.memory_space<vmem>>, %arg6: memref<1x4xf32, #tpu.memory_space<vmem>>, %arg7: memref<1x8x128xf32, #tpu.memory_space<vmem>>) attributes {dimension_semantics = [#tpu.dimension_semantics<parallel>, #tpu.dimension_semantics<parallel>], iteration_bounds = array<i64: 2, 2>, scalar_prefetch = 0 : i64, scratch_operands = 0 : i64, tpu.core_type = #tpu.core_type<tc>, window_params = [{transform_indices = @transform_0, window_bounds = array<i64: 1, 8, 18, 4>}, {transform_indices = @transform_1, window_bounds = array<i64: 1, 1, 18, 4>}, {transform_indices = @transform_2, window_bounds = array<i64: 1, 1, 18, 4>}, {pipeline_mode = #tpu.pipeline_mode<synchronous>, transform_indices = @transform_3, window_bounds = array<i64: 9, 4, 4>}, {pipeline_mode = #tpu.pipeline_mode<synchronous>, transform_indices = @transform_4, window_bounds = array<i64: 1, 4>}, {transform_indices = @transform_5, window_bounds = array<i64: 1, 8, 128>}]} {
    %c0 = arith.constant 0 : index
    %c0_0 = arith.constant 0 : index
    %c0_1 = arith.constant 0 : index
    %c0_2 = arith.constant 0 : index
    %0 = vector.load %arg2[%c0, %c0_0, %c0_1, %c0_2] : memref<1x8x18x4xf32, #tpu.memory_space<vmem>>, vector<1x8x18x4xf32>
    %1 = vector.shape_cast %0 : vector<1x8x18x4xf32> to vector<8x18x4xf32>
    %c0_3 = arith.constant 0 : index
    %c0_4 = arith.constant 0 : index
    %c0_5 = arith.constant 0 : index
    %c0_6 = arith.constant 0 : index
    %2 = vector.load %arg3[%c0_3, %c0_4, %c0_5, %c0_6] : memref<1x1x18x4xf32, #tpu.memory_space<vmem>>, vector<1x1x18x4xf32>
    %3 = vector.shape_cast %2 : vector<1x1x18x4xf32> to vector<1x18x4xf32>
    %c0_7 = arith.constant 0 : index
    %c0_8 = arith.constant 0 : index
    %c0_9 = arith.constant 0 : index
    %c0_10 = arith.constant 0 : index
    %4 = vector.load %arg4[%c0_7, %c0_8, %c0_9, %c0_10] : memref<1x1x18x4xf32, #tpu.memory_space<vmem>>, vector<1x1x18x4xf32>
    %5 = vector.shape_cast %4 : vector<1x1x18x4xf32> to vector<1x18x4xf32>
    %6 = tpu.concatenate %3, %1, %5 in 0 : vector<1x18x4xf32>, vector<8x18x4xf32>, vector<1x18x4xf32> -> vector<10x18x4xf32>
    %cst = arith.constant 0.000000e+00 : f32
    %7 = vector.broadcast %cst : f32 to vector<128x4xf32>
    %8 = vector.extract_strided_slice %6 {offsets = [0, 0, 0], sizes = [8, 18, 4], strides = [1, 1, 1]} : vector<10x18x4xf32> to vector<8x18x4xf32>
    %9 = vector.extract_strided_slice %8 {offsets = [0, 0, 0], sizes = [8, 16, 4], strides = [1, 1, 1]} : vector<8x18x4xf32> to vector<8x16x4xf32>
    %10 = vector.shape_cast %9 : vector<8x16x4xf32> to vector<128x4xf32>
    %c0_11 = arith.constant 0 : index
    %c0_12 = arith.constant 0 : index
    %c0_13 = arith.constant 0 : index
    %11 = vector.load %arg5[%c0_11, %c0_12, %c0_13] : memref<9x4x4xf32, #tpu.memory_space<vmem>>, vector<1x4x4xf32>
    %12 = vector.shape_cast %11 : vector<1x4x4xf32> to vector<4x4xf32>
    %cst_14 = arith.constant dense<0.000000e+00> : vector<128x4xf32>
    %13 = tpu.matmul %10, %12, %cst_14 {dimension_numbers = #tpu.dot_dimension_numbers<[1], [0], [0], [1], [0, 0, 1, 1], [], []>} : vector<128x4xf32>, vector<4x4xf32>, vector<128x4xf32> -> vector<128x4xf32>
    %14 = arith.addf %7, %13 : vector<128x4xf32>
    %15 = vector.extract_strided_slice %8 {offsets = [0, 1, 0], sizes = [8, 16, 4], strides = [1, 1, 1]} : vector<8x18x4xf32> to vector<8x16x4xf32>
    %16 = vector.shape_cast %15 : vector<8x16x4xf32> to vector<128x4xf32>
    %c1 = arith.constant 1 : index
    %c0_15 = arith.constant 0 : index
    %c0_16 = arith.constant 0 : index
    %17 = vector.load %arg5[%c1, %c0_15, %c0_16] : memref<9x4x4xf32, #tpu.memory_space<vmem>>, vector<1x4x4xf32>
    %18 = vector.shape_cast %17 : vector<1x4x4xf32> to vector<4x4xf32>
    %cst_17 = arith.constant dense<0.000000e+00> : vector<128x4xf32>
    %19 = tpu.matmul %16, %18, %cst_17 {dimension_numbers = #tpu.dot_dimension_numbers<[1], [0], [0], [1], [0, 0, 1, 1], [], []>} : vector<128x4xf32>, vector<4x4xf32>, vector<128x4xf32> -> vector<128x4xf32>
    %20 = arith.addf %14, %19 : vector<128x4xf32>
    %21 = vector.extract_strided_slice %8 {offsets = [0, 2, 0], sizes = [8, 16, 4], strides = [1, 1, 1]} : vector<8x18x4xf32> to vector<8x16x4xf32>
    %22 = vector.shape_cast %21 : vector<8x16x4xf32> to vector<128x4xf32>
    %c2 = arith.constant 2 : index
    %c0_18 = arith.constant 0 : index
    %c0_19 = arith.constant 0 : index
    %23 = vector.load %arg5[%c2, %c0_18, %c0_19] : memref<9x4x4xf32, #tpu.memory_space<vmem>>, vector<1x4x4xf32>
    %24 = vector.shape_cast %23 : vector<1x4x4xf32> to vector<4x4xf32>
    %cst_20 = arith.constant dense<0.000000e+00> : vector<128x4xf32>
    %25 = tpu.matmul %22, %24, %cst_20 {dimension_numbers = #tpu.dot_dimension_numbers<[1], [0], [0], [1], [0, 0, 1, 1], [], []>} : vector<128x4xf32>, vector<4x4xf32>, vector<128x4xf32> -> vector<128x4xf32>
    %26 = arith.addf %20, %25 : vector<128x4xf32>
    %27 = vector.extract_strided_slice %6 {offsets = [1, 0, 0], sizes = [8, 18, 4], strides = [1, 1, 1]} : vector<10x18x4xf32> to vector<8x18x4xf32>
    %28 = vector.extract_strided_slice %27 {offsets = [0, 0, 0], sizes = [8, 16, 4], strides = [1, 1, 1]} : vector<8x18x4xf32> to vector<8x16x4xf32>
    %29 = vector.shape_cast %28 : vector<8x16x4xf32> to vector<128x4xf32>
    %c3 = arith.constant 3 : index
    %c0_21 = arith.constant 0 : index
    %c0_22 = arith.constant 0 : index
    %30 = vector.load %arg5[%c3, %c0_21, %c0_22] : memref<9x4x4xf32, #tpu.memory_space<vmem>>, vector<1x4x4xf32>
    %31 = vector.shape_cast %30 : vector<1x4x4xf32> to vector<4x4xf32>
    %cst_23 = arith.constant dense<0.000000e+00> : vector<128x4xf32>
    %32 = tpu.matmul %29, %31, %cst_23 {dimension_numbers = #tpu.dot_dimension_numbers<[1], [0], [0], [1], [0, 0, 1, 1], [], []>} : vector<128x4xf32>, vector<4x4xf32>, vector<128x4xf32> -> vector<128x4xf32>
    %33 = arith.addf %26, %32 : vector<128x4xf32>
    %34 = vector.extract_strided_slice %27 {offsets = [0, 1, 0], sizes = [8, 16, 4], strides = [1, 1, 1]} : vector<8x18x4xf32> to vector<8x16x4xf32>
    %35 = vector.shape_cast %34 : vector<8x16x4xf32> to vector<128x4xf32>
    %c4 = arith.constant 4 : index
    %c0_24 = arith.constant 0 : index
    %c0_25 = arith.constant 0 : index
    %36 = vector.load %arg5[%c4, %c0_24, %c0_25] : memref<9x4x4xf32, #tpu.memory_space<vmem>>, vector<1x4x4xf32>
    %37 = vector.shape_cast %36 : vector<1x4x4xf32> to vector<4x4xf32>
    %cst_26 = arith.constant dense<0.000000e+00> : vector<128x4xf32>
    %38 = tpu.matmul %35, %37, %cst_26 {dimension_numbers = #tpu.dot_dimension_numbers<[1], [0], [0], [1], [0, 0, 1, 1], [], []>} : vector<128x4xf32>, vector<4x4xf32>, vector<128x4xf32> -> vector<128x4xf32>
    %39 = arith.addf %33, %38 : vector<128x4xf32>
    %40 = vector.extract_strided_slice %27 {offsets = [0, 2, 0], sizes = [8, 16, 4], strides = [1, 1, 1]} : vector<8x18x4xf32> to vector<8x16x4xf32>
    %41 = vector.shape_cast %40 : vector<8x16x4xf32> to vector<128x4xf32>
    %c5 = arith.constant 5 : index
    %c0_27 = arith.constant 0 : index
    %c0_28 = arith.constant 0 : index
    %42 = vector.load %arg5[%c5, %c0_27, %c0_28] : memref<9x4x4xf32, #tpu.memory_space<vmem>>, vector<1x4x4xf32>
    %43 = vector.shape_cast %42 : vector<1x4x4xf32> to vector<4x4xf32>
    %cst_29 = arith.constant dense<0.000000e+00> : vector<128x4xf32>
    %44 = tpu.matmul %41, %43, %cst_29 {dimension_numbers = #tpu.dot_dimension_numbers<[1], [0], [0], [1], [0, 0, 1, 1], [], []>} : vector<128x4xf32>, vector<4x4xf32>, vector<128x4xf32> -> vector<128x4xf32>
    %45 = arith.addf %39, %44 : vector<128x4xf32>
    %46 = vector.extract_strided_slice %6 {offsets = [2, 0, 0], sizes = [8, 18, 4], strides = [1, 1, 1]} : vector<10x18x4xf32> to vector<8x18x4xf32>
    %47 = vector.extract_strided_slice %46 {offsets = [0, 0, 0], sizes = [8, 16, 4], strides = [1, 1, 1]} : vector<8x18x4xf32> to vector<8x16x4xf32>
    %48 = vector.shape_cast %47 : vector<8x16x4xf32> to vector<128x4xf32>
    %c6 = arith.constant 6 : index
    %c0_30 = arith.constant 0 : index
    %c0_31 = arith.constant 0 : index
    %49 = vector.load %arg5[%c6, %c0_30, %c0_31] : memref<9x4x4xf32, #tpu.memory_space<vmem>>, vector<1x4x4xf32>
    %50 = vector.shape_cast %49 : vector<1x4x4xf32> to vector<4x4xf32>
    %cst_32 = arith.constant dense<0.000000e+00> : vector<128x4xf32>
    %51 = tpu.matmul %48, %50, %cst_32 {dimension_numbers = #tpu.dot_dimension_numbers<[1], [0], [0], [1], [0, 0, 1, 1], [], []>} : vector<128x4xf32>, vector<4x4xf32>, vector<128x4xf32> -> vector<128x4xf32>
    %52 = arith.addf %45, %51 : vector<128x4xf32>
    %53 = vector.extract_strided_slice %46 {offsets = [0, 1, 0], sizes = [8, 16, 4], strides = [1, 1, 1]} : vector<8x18x4xf32> to vector<8x16x4xf32>
    %54 = vector.shape_cast %53 : vector<8x16x4xf32> to vector<128x4xf32>
    %c7 = arith.constant 7 : index
    %c0_33 = arith.constant 0 : index
    %c0_34 = arith.constant 0 : index
    %55 = vector.load %arg5[%c7, %c0_33, %c0_34] : memref<9x4x4xf32, #tpu.memory_space<vmem>>, vector<1x4x4xf32>
    %56 = vector.shape_cast %55 : vector<1x4x4xf32> to vector<4x4xf32>
    %cst_35 = arith.constant dense<0.000000e+00> : vector<128x4xf32>
    %57 = tpu.matmul %54, %56, %cst_35 {dimension_numbers = #tpu.dot_dimension_numbers<[1], [0], [0], [1], [0, 0, 1, 1], [], []>} : vector<128x4xf32>, vector<4x4xf32>, vector<128x4xf32> -> vector<128x4xf32>
    %58 = arith.addf %52, %57 : vector<128x4xf32>
    %59 = vector.extract_strided_slice %46 {offsets = [0, 2, 0], sizes = [8, 16, 4], strides = [1, 1, 1]} : vector<8x18x4xf32> to vector<8x16x4xf32>
    %60 = vector.shape_cast %59 : vector<8x16x4xf32> to vector<128x4xf32>
    %c8 = arith.constant 8 : index
    %c0_36 = arith.constant 0 : index
    %c0_37 = arith.constant 0 : index
    %61 = vector.load %arg5[%c8, %c0_36, %c0_37] : memref<9x4x4xf32, #tpu.memory_space<vmem>>, vector<1x4x4xf32>
    %62 = vector.shape_cast %61 : vector<1x4x4xf32> to vector<4x4xf32>
    %cst_38 = arith.constant dense<0.000000e+00> : vector<128x4xf32>
    %63 = tpu.matmul %60, %62, %cst_38 {dimension_numbers = #tpu.dot_dimension_numbers<[1], [0], [0], [1], [0, 0, 1, 1], [], []>} : vector<128x4xf32>, vector<4x4xf32>, vector<128x4xf32> -> vector<128x4xf32>
    %64 = arith.addf %58, %63 : vector<128x4xf32>
    %c0_39 = arith.constant 0 : index
    %c0_40 = arith.constant 0 : index
    %65 = vector.load %arg6[%c0_39, %c0_40] : memref<1x4xf32, #tpu.memory_space<vmem>>, vector<1x4xf32>
    %66 = vector.broadcast %65 : vector<1x4xf32> to vector<128x4xf32>
    %67 = arith.addf %64, %66 : vector<128x4xf32>
    %cst_41 = arith.constant 0.000000e+00 : f32
    %68 = vector.broadcast %cst_41 : f32 to vector<128x4xf32>
    %69 = arith.maximumf %67, %68 : vector<128x4xf32>
    %70 = vector.extract_strided_slice %1 {offsets = [0, 1, 0], sizes = [8, 16, 4], strides = [1, 1, 1]} : vector<8x18x4xf32> to vector<8x16x4xf32>
    %71 = vector.shape_cast %70 : vector<8x16x4xf32> to vector<128x4xf32>
    %72 = tpu.concatenate %71, %69 in 1 : vector<128x4xf32>, vector<128x4xf32> -> vector<128x8xf32>
    %73 = tpu.transpose %72, [1, 0] : vector<128x8xf32> -> vector<8x128xf32>
    %c0_42 = arith.constant 0 : index
    %c0_43 = arith.constant 0 : index
    %c0_44 = arith.constant 0 : index
    %74 = vector.load %arg7[%c0_42, %c0_43, %c0_44] : memref<1x8x128xf32, #tpu.memory_space<vmem>>, vector<1x8x128xf32>
    %75 = vector.shape_cast %74 : vector<1x8x128xf32> to vector<8x128xf32>
    %76 = vector.shape_cast %73 : vector<8x128xf32> to vector<1x8x128xf32>
    tpu.vector_store %arg7[%c0_42, %c0_43, %c0_44], %76 {strides = array<i32>} : memref<1x8x128xf32, #tpu.memory_space<vmem>>, vector<1x8x128xf32>,
    return
  }
  func.func @transform_0(%arg0: i32, %arg1: i32) -> (i32, i32, i32, i32) {
    %c0_i32 = arith.constant 0 : i32
    %c0_i32_0 = arith.constant 0 : i32
    %c0_i32_1 = arith.constant 0 : i32
    return %arg0, %arg1, %c0_i32, %c0_i32_0 : i32, i32, i32, i32
  }
  func.func @transform_1(%arg0: i32, %arg1: i32) -> (i32, i32, i32, i32) {
    %c0_i32 = arith.constant 0 : i32
    %c0_i32_0 = arith.constant 0 : i32
    %c0_i32_1 = arith.constant 0 : i32
    return %arg0, %arg1, %c0_i32, %c0_i32_0 : i32, i32, i32, i32
  }
  func.func @transform_2(%arg0: i32, %arg1: i32) -> (i32, i32, i32, i32) {
    %c0_i32 = arith.constant 0 : i32
    %c0_i32_0 = arith.constant 0 : i32
    %c0_i32_1 = arith.constant 0 : i32
    return %arg0, %arg1, %c0_i32, %c0_i32_0 : i32, i32, i32, i32
  }
  func.func @transform_3(%arg0: i32, %arg1: i32) -> (i32, i32, i32) {
    %c0_i32 = arith.constant 0 : i32
    %c0_i32_0 = arith.constant 0 : i32
    %c0_i32_1 = arith.constant 0 : i32
    %c0_i32_2 = arith.constant 0 : i32
    return %c0_i32, %c0_i32_0, %c0_i32_1 : i32, i32, i32
  }
  func.func @transform_4(%arg0: i32, %arg1: i32) -> (i32, i32) {
    %c0_i32 = arith.constant 0 : i32
    %c0_i32_0 = arith.constant 0 : i32
    %c0_i32_1 = arith.constant 0 : i32
    return %c0_i32, %c0_i32_0 : i32, i32
  }
  func.func @transform_5(%arg0: i32, %arg1: i32) -> (i32, i32, i32) {
    %c0_i32 = arith.constant 0 : i32
    %c0_i32_0 = arith.constant 0 : i32
    return %arg0, %c0_i32, %arg1 : i32, i32, i32
  }
}

</mosaic_0001>

<bundles_post_ra>
// kernel: dense_layer_forward.1
= control target key start
LH: loop header
LB: loop body
LE: loop exit
PB: predicated region body
PF: predicated region fallthrough
CT: control target
= control target key end

     0   :  { %s3056_s18 = smov 0   ;;  %s3058_s19 = smov 0   ;;  %s3990_s0 = inlined_call_operand.vmem [shape: f32[2,16,18,4], index: 0, kind: input, shape index: {}]   ;;  %s3991_s1 = inlined_call_operand.vmem [shape: f32[2,2,18,4], index: 1, kind: input, shape index: {}]   ;;  %s3992_s2 = inlined_call_operand.vmem [shape: f32[2,2,18,4], index: 2, kind: input, shape index: {}]   ;;  %s3993_s3 = inlined_call_operand.vmem [shape: f32[9,4,4], index: 3, kind: input, shape index: {}]   ;;  %s3994_s4 = inlined_call_operand.vmem [shape: f32[1,4], index: 4, kind: input, shape index: {}]   ;;  %s3995_s5 = inlined_call_operand.vmem [shape: f32[2,8,256], index: 5, kind: output, shape index: {}]  }
   0x1   :  { %s3060_s20 = smov 0   ;;  %s3062_s21 = smov 0  }
   0x2   :  { %s3064_s22 = smov 0  }
   0x3 LB: > { %s24_s23 = sadd.s32 1, %s3015_s20  ;;  %s27_s24 = sadd.s32 1, %s3019_s21  ;;  %s3023_s22 = sphi %s3064_s22, %s15_s22   ;;  %s3019_s21 = sphi %s3062_s21, %s4085_s21   ;;  %s3015_s20 = sphi %s3060_s20, %s4084_s20   ;;  %s3011_s19 = sphi %s3058_s19, %s4083_s19   ;;  %s3007_s18 = sphi %s3056_s18, %s4082_s18  }
   0x4   : > { %p25_p0 = scmp.ge.s32.totalorder %s24_s23, 2  ;;  %p2380_p1 = scmp.ge.s32.totalorder %s3023_s22, 1 }
   0x5   : > { %p241_p2 = scmp.lt.s32.totalorder %s3023_s22, 5 }
   0x6   : > { %s4087_s23 = smov (%p25_p0, %s24_s23), 0  ;;  %s4089_s24 = smov (!%p25_p0, %s27_s24), %s3019_s21 }
   0x7   : > { %p242_p3 = pnand %p2380_p1, %p241_p2  ;;  %p29_p4 = scmp.ge.s32.totalorder %s4089_s24, 2 }
   0x9   : > { %s4091_s24 = smov (%p29_p4, %s4089_s24), 0  ;;  %245 = sbr.rel (%p242_p3) target bundleno = 588 (0x24c), region = 40 }
   0xe   : > { %v2387_v0 = vld [vmem:[%s3993_s3 + $0x4] sm:$0xf]  ;;  %vm463_vm0 = vcmask 1043456   ;;  %s2381_s27 = sshll.u32 %s3007_s18, 3  ;;  %p296_p5 = scmp.lt.s32.totalorder %s3011_s19, 1  ;;  %vm387_vm1 = vcmask 1046528  }
   0xf   : > { %2938 = vmatprep.subr.msk.mxu1 %vm463_vm0, %v2387_v0  ;;  %2704 = vmatprep.subr.msk.mxu0 %vm463_vm0, %v2387_v0  ;;  %p298_p6 = scmp.lt.s32.totalorder %s2381_s27, 15  ;;  %p308_p7 = scmp.lt.s32.totalorder %s3007_s18, 1  ;;  %v362_v1 = vld [vmem:[%s3993_s3] sm:$0xf]  ;;  %v3105_v2 = vld [vmem:[%s3993_s3 + $0x8] sm:$0xf] }
  0x10   : > { %2939 = vmatpush3.msk.msra.mxu1 %vm463_vm0, %v2387_v0  ;;  %2705 = vmatpush3.msk.msra.mxu0 %vm463_vm0, %v2387_v0  ;;  %s4093_s19 = smov (!%p296_p5, %s3011_s19), 1  ;;  %vm430_vm2 = vcmask 31744   ;;  %v3161_v16 = vld [vmem:[%s3993_s3 + $0xc] sm:$0xf]  ;;  %v3207_v35 = vld [vmem:[%s3993_s3 + $0x10] sm:$0xf] }
  0x11   : > { %s4095_s27 = smov (!%p298_p6, %s2381_s27), 15  ;;  %2730 = vmatprep.subr.msk.mxu1 %vm463_vm0, %v362_v1  ;;  %2756 = vmatprep.subr.msk.mxu0 %vm463_vm0, %v3105_v2  ;;  %s2941_s7 = smul.u32 48, %s4093_s19  ;;  %vm792_vm3 = vcmask 1045504  }
  0x12   : > { %s2940_s8 = smul.u32 3, %s4095_s27  ;;  %s4097_s18 = smov (!%p308_p7, %s3007_s18), 1 }
  0x13   : > { %s2943_s10 = smul.u32 6, %s4093_s19  ;;  %s2385_s28 = sshll.u32 %s4093_s19, 1 }
  0x14   : > { %s302_s9 = sadd.s32 %s2941_s7, %s2940_s8  ;;  %s2942_s12 = smul.u32 3, %s4097_s18 }
  0x15   : > { %s2382_s11 = sshll.u32 %s302_s9, 3  ;;  %s329_s29 = sadd.s32 %s2385_s28, %s4097_s18 }
  0x16   : > { %s3119_s15 = scalar_lea.vmem %s3990_s0, %s2382_s11  ;;  %s3121_s16 = sadd.s32 %s2943_s10, %s2942_s12 }
  0x17   : > { %v3124_v3 = vld [vmem:[%s3119_s15 + $0x48] sm:$0xff]  ;;  %v3127_v4 = vld [vmem:[%s3119_s15 + $0x50] sm:$0xff]  ;;  %v3130_v5 = vld [vmem:[%s3119_s15 + $0x58] sm:$0x3]  ;;  %s2383_s17 = sshll.u32 %s3121_s16, 3  ;;  %s2386_s30 = sshll.u32 %s329_s29, 3 }
  0x18   : > { %v408_v6 = vrot.slane %v3124_v3, 1  ;;  %v409_v7 = vrot.slane %v3127_v4, 1  ;;  %v411_v8 = vrot.slane %v3130_v5, 1  ;;  %v3137_v9 = vld [vmem:[%s3119_s15] sm:$0xff]  ;;  %v3140_v10 = vld [vmem:[%s3119_s15 + $0x8] sm:$0xff]  ;;  %s314_s27 = scalar_lea.vmem %s3991_s1, %s2383_s17  ;;  %v3196_v32 = vld [vmem:[%s3119_s15 + $0x18] sm:$0xff]  ;;  %s323_s9 = scalar_lea.vmem %s3992_s2, %s2383_s17 }
  0x19   : > { %v393_v11 = vrot.slane %v3137_v9, 1  ;;  %v394_v12 = vrot.slane %v3140_v10, 1  ;;  %v3150_v13 = vld [vmem:[%s3119_s15 + $0x60] sm:$0xff]  ;;  %v3153_v14 = vld [vmem:[%s3119_s15 + $0x68] sm:$0xff]  ;;  %v3156_v15 = vld [vmem:[%s3119_s15 + $0x10] sm:$0x3]  ;;  %s331_s8 = scalar_lea.vmem %s3995_s5, %s2386_s30 }
  0x1a   : > { %v3163_v17 = vld [vmem:[%s314_s27] sm:$0xff]  ;;  %v3165_v18 = vld [vmem:[%s314_s27 + $0x8] sm:$0xff]  ;;  %v3168_v19 = vsel %vm387_vm1, %v408_v6, %v409_v7  ;;  %v3170_v20 = vld [vmem:[%s314_s27 + $0x10] sm:$0x3]  ;;  %v3173_v21 = vsel %vm387_vm1, %v409_v7, %v411_v8  ;;  %v413_v22 = vrot.slane %v3150_v13, 1  ;;  %v414_v23 = vrot.slane %v3153_v14, 1 }
  0x1b   : > { %4012 = vst [vmem:[#allocation2_spill] sm:$0xff] %v3168_v19  ;;  %4013 = vst [vmem:[#allocation3_spill] sm:$0xff] %v3173_v21  ;;  %v388_v24 = vrot.slane %v3163_v17, 1  ;;  %v389_v25 = vrot.slane %v3165_v18, 1  ;;  %2718 = vmatprep.mubr.msk.f32.mxu1 %vm430_vm2, %v3168_v19  ;;  %v391_v26 = vrot.slane %v3170_v20, 1  ;;  %v3188_v28 = vsel %vm387_vm1, %v393_v11, %v394_v12  ;;  %v3199_v33 = vld [vmem:[%s3119_s15 + $0x20] sm:$0xff] }
  0x1c   : > { %v3183_v27 = vld [vmem:[%s3119_s15 + $0x70] sm:$0x3]  ;;  %2719 = vmatmul.mubr.msk.f32.vlgmr.msra.gmra.mxu1 %vm430_vm2, %v3173_v21  ;;  %4014 = vst [vmem:[#allocation4_spill] sm:$0xff] %v3188_v28  ;;  %v3191_v29 = vsel %vm387_vm1, %v413_v22, %v414_v23  ;;  %v396_v30 = vrot.slane %v3156_v15, 1  ;;  %v3202_v34 = vld [vmem:[%s3119_s15 + $0x78] sm:$0xff]  ;;  %v398_v38 = vrot.slane %v3196_v32, 1 }
  0x1d   : > { %4015 = vst [vmem:[#allocation5_spill] sm:$0xff] %v3191_v29  ;;  %v416_v31 = vrot.slane %v3183_v27, 1  ;;  %v390_v36 = vsel %vm387_vm1, %v388_v24, %v389_v25  ;;  %v392_v37 = vsel %vm387_vm1, %v389_v25, %v391_v26  ;;  %2731 = vmatpush3.msk.msra.mxu1 %vm463_vm0, %v362_v1  ;;  %2721 = vmatprep.mubr.msk.f32.mxu1 %vm430_vm2, %v3191_v29  ;;  %v399_v39 = vrot.slane %v3199_v33, 1  ;;  %v3217_v40 = vld [vmem:[%s3119_s15 + $0x80] sm:$0xff]  ;;  %v3220_v41 = vld [vmem:[%s3119_s15 + $0x28] sm:$0x3] }
  0x1e   : > { %v3223_v42 = vld [vmem:[%s3119_s15 + $0x30] sm:$0xff]  ;;  %2706 = vmatprep.mubr.msk.f32.mxu0 %vm430_vm2, %v390_v36  ;;  %v418_v44 = vrot.slane %v3202_v34, 1  ;;  %v419_v45 = vrot.slane %v3217_v40, 1  ;;  %v3232_v46 = vld [vmem:[%s3119_s15 + $0x88] sm:$0x3]  ;;  %v3235_v47 = vld [vmem:[%s3119_s15 + $0x38] sm:$0xff]  ;;  %2782 = vmatprep.subr.msk.mxu1 %vm463_vm0, %v3161_v16  ;;  %v3244_v49 = vsel %vm387_vm1, %v394_v12, %v396_v30 }
  0x1f   : > { %v3227_v43 = vsel %vm387_vm1, %v414_v23, %v416_v31  ;;  %v3238_v48 = vld [vmem:[%s3119_s15 + $0x90] sm:$0xff]  ;;  %2707 = vmatmul.mubr.msk.f32.vlgmr.msra.gmra.mxu0 %vm430_vm2, %v392_v37  ;;  %4017 = vst [vmem:[#allocation7_spill] sm:$0xff] %v3244_v49  ;;  %v421_v50 = vrot.slane %v3232_v46, 1  ;;  %v3248_v51 = vld [vmem:[%s3119_s15 + $0x98] sm:$0xff]  ;;  %v401_v53 = vrot.slane %v3220_v41, 1  ;;  %v3266_v57 = vsel %vm387_vm1, %v398_v38, %v399_v39  ;;  %v3315_v24 = vld [vmem:[%s3119_s15 + $0xa8] sm:$0xff] }
  0x20   : > { %4016 = vst [vmem:[#allocation6_spill] sm:$0xff] %v3227_v43  ;;  %2757 = vmatpush3.msk.msra.mxu0 %vm463_vm0, %v3105_v2  ;;  %2709 = vmatprep.mubr.msk.f32.mxu0 %vm430_vm2, %v3188_v28  ;;  %v3255_v52 = vsel %vm387_vm1, %v418_v44, %v419_v45  ;;  %v423_v54 = vrot.slane %v3238_v48, 1  ;;  %v424_v55 = vrot.slane %v3248_v51, 1  ;;  %v3261_v56 = vld [vmem:[%s3119_s15 + $0xa0] sm:$0x3]  ;;  %4019 = vst [vmem:[#allocation9_spill] sm:$0xff] %v3266_v57 }
  0x21   : > { %4018 = vst [vmem:[#allocation8_spill] sm:$0xff] %v3255_v52  ;;  %2722 = vmatmul.mubr.msk.f32.gmra.mxu1 %vm430_vm2, %v3227_v43  ;;  %v403_v58 = vrot.slane %v3223_v42, 1  ;;  %v404_v59 = vrot.slane %v3235_v47, 1  ;;  %v3271_v60 = vld [vmem:[%s3119_s15 + $0x40] sm:$0x3]  ;;  %2808 = vmatprep.subr.msk.mxu0 %vm463_vm0, %v3207_v35  ;;  %v3278_v61 = vsel %vm387_vm1, %v419_v45, %v421_v50  ;;  %v426_v62 = vrot.slane %v3261_v56, 1 }
  0x22   : > { %2724 = vmatprep.mubr.msk.f32.mxu1 %vm430_vm2, %v3255_v52  ;;  %4020 = vst [vmem:[#allocation10_spill] sm:$0xff] %v3278_v61  ;;  %v3284_v63 = vsel %vm387_vm1, %v423_v54, %v424_v55  ;;  %v3289_v0 = vsel %vm387_vm1, %v399_v39, %v401_v53  ;;  %v406_v1 = vrot.slane %v3271_v60, 1  ;;  %v793_v6 = vrot.slane %v3163_v17, 2  ;;  %v3321_v25 = vld [vmem:[%s3119_s15 + $0xb0] sm:$0xff]  ;;  %v355_v26 = vld [vmem:[%s3119_s15 + $0xb8] sm:$0x3] }
  0x23   : > { %2710 = vmatmul.mubr.msk.f32.gmra.mxu0 %vm430_vm2, %v3244_v49  ;;  %4021 = vst [vmem:[#allocation11_spill] sm:$0xff] %v3284_v63  ;;  %4022 = vst [vmem:[#allocation12_spill] sm:$0xff] %v3289_v0  ;;  %v3295_v2 = vsel %vm387_vm1, %v403_v58, %v404_v59  ;;  %v794_v7 = vrot.slane %v3165_v18, 2  ;;  %v3302_v8 = vsel %vm387_vm1, %v424_v55, %v426_v62  ;;  %v796_v11 = vrot.slane %v3170_v20, 2  ;;  %v3349_v45 = vld [vmem:[%s323_s9] sm:$0xff]  ;;  %s3025_s27 = smov 4  }
  0x24   : > { %2712 = vmatprep.mubr.msk.f32.mxu0 %vm430_vm2, %v3266_v57  ;;  %4023 = vst [vmem:[#allocation13_spill] sm:$0xff] %v3295_v2  ;;  %4024 = vst [vmem:[#allocation14_spill] sm:$0xff] %v3302_v8  ;;  %v3310_v12 = vsel %vm387_vm1, %v404_v59, %v406_v1  ;;  %v798_v22 = vrot.slane %v3137_v9, 2  ;;  %v799_v23 = vrot.slane %v3140_v10, 2  ;;  %v801_v31 = vrot.slane %v3156_v15, 2 }
  0x25   : > { %2725 = vmatmul.mubr.msk.f32.gmra.mxu1 %vm430_vm2, %v3278_v61  ;;  %4025 = vst [vmem:[#allocation15_spill] sm:$0xff] %v3310_v12  ;;  %v795_v20 = vsel %vm792_vm3, %v793_v6, %v794_v7  ;;  %v797_v30 = vsel %vm792_vm3, %v794_v7, %v796_v11  ;;  %v803_v36 = vrot.slane %v3196_v32, 2  ;;  %v1204_v37 = vrot.slane %v3315_v24, 1  ;;  %v361_v58 = vld [vmem:[%s323_s9 + $0x10] sm:$0x3]  ;;  %v3370_v6 = vld [vmem:[%s323_s9 + $0x8] sm:$0xff] }
  0x26   : > { %2727 = vmatprep.mubr.msk.f32.mxu1 %vm430_vm2, %v3284_v63  ;;  %v3339_v38 = vsel %vm792_vm3, %v798_v22, %v799_v23  ;;  %v804_v39 = vrot.slane %v3199_v33, 2  ;;  %v1379_v44 = vrot.slane %v3315_v24, 2  ;;  %v1205_v15 = vrot.slane %v3321_v25, 1  ;;  %v3363_v59 = vld [vmem:[%s3993_s3 + $0x18] sm:$0xf] }
  0x27   : > { %2713 = vmatmul.mubr.msk.f32.gmra.mxu0 %vm430_vm2, %v3289_v0  ;;  %v806_v50 = vrot.slane %v3220_v41, 2  ;;  %v808_v53 = vrot.slane %v3223_v42, 2  ;;  %v1207_v54 = vrot.slane %v355_v26, 1  ;;  %v1380_v55 = vrot.slane %v3321_v25, 2 }
  0x28   : > { %2715 = vmatprep.mubr.msk.f32.mxu0 %vm430_vm2, %v3295_v2  ;;  %v1727_v41 = vrot.slane %v3349_v45, 1  ;;  %v1902_v62 = vrot.slane %v3349_v45, 2  ;;  %v1382_v1 = vrot.slane %v355_v26, 2  ;;  %v1728_v11 = vrot.slane %v3370_v6, 1 }
  0x29   : > { %2728 = vmatmul.mubr.msk.f32.gmra.mxu1 %vm430_vm2, %v3302_v8  ;;  %v3379_v7 = vsel %vm792_vm3, %v1379_v44, %v1380_v55  ;;  %v1903_v22 = vrot.slane %v3370_v6, 2  ;;  %v3396_v44 = vsel %vm792_vm3, %v803_v36, %v804_v39 }
  0x2a   : > { %2732 = vmatprep.mubr.msk.f32.mxu1 %vm430_vm2, %v3163_v17  ;;  %v3345_v17 = vld [vmem:[%s3993_s3 + $0x14] sm:$0xf]  ;;  %v3391_v26 = vsel %vm792_vm3, %v1380_v55, %v1382_v1  ;;  %v811_v55 = vrot.slane %v3271_v60, 2  ;;  %v819_v1 = vrot.slane %v3153_v14, 2 }
  0x2b   : > { %2716 = vmatmul.mubr.msk.f32.gmra.mxu0 %vm430_vm2, %v3310_v12 }
  0x2c   : > { %2758 = vmatprep.mubr.msk.f32.mxu0 %vm430_vm2, %v795_v20  ;;  %v3388_v20 = vsel %vm792_vm3, %v799_v23, %v801_v31  ;;  %v3405_v23 = vsel %vm792_vm3, %v1902_v62, %v1903_v22  ;;  %v814_v62 = vrot.slane %v3127_v4, 2 }
  0x2d   : > { %2733 = vmatmul.mubr.msk.f32.vlgmr.msra.gmra.mxu1 %vm430_vm2, %v3165_v18  ;;  %v3366_v18 = vsel %vm387_vm1, %v1204_v37, %v1205_v15  ;;  %v1905_v37 = vrot.slane %v361_v58, 2 }
  0x2e   : > { %2783 = vmatpush3.msk.msra.mxu1 %vm463_vm0, %v3161_v16  ;;  %2735 = vmatprep.mubr.msk.f32.mxu1 %vm430_vm2, %v3137_v9  ;;  %4026 = vst [vmem:[#allocation16_spill] sm:$0xff] %v3366_v18  ;;  %v3376_v16 = vsel %vm387_vm1, %v1205_v15, %v1207_v54  ;;  %v809_v15 = vrot.slane %v3235_v47, 2  ;;  %v3420_v54 = vsel %vm792_vm3, %v804_v39, %v806_v50  ;;  %v816_v39 = vrot.slane %v3130_v5, 2 }
  0x2f   : > { %2759 = vmatmul.mubr.msk.f32.vlgmr.msra.gmra.mxu0 %vm430_vm2, %v797_v30  ;;  %2834 = vmatprep.subr.msk.mxu1 %vm463_vm0, %v3345_v17  ;;  %4027 = vst [vmem:[#allocation17_spill] sm:$0xff] %v3376_v16  ;;  %v1730_v30 = vrot.slane %v361_v58, 1  ;;  %v3413_v36 = vsel %vm792_vm3, %v1903_v22, %v1905_v37  ;;  %v824_v37 = vrot.slane %v3217_v40, 2 }
  0x30   : > { %2809 = vmatpush3.msk.msra.mxu0 %vm463_vm0, %v3207_v35  ;;  %2761 = vmatprep.mubr.msk.f32.mxu0 %vm430_vm2, %v3339_v38  ;;  %v3402_v35 = vsel %vm387_vm1, %v1727_v41, %v1728_v11  ;;  %v3426_v58 = vsel %vm792_vm3, %v808_v53, %v809_v15  ;;  %v813_v41 = vrot.slane %v3124_v3, 2  ;;  %v3437_v60 = vsel %vm792_vm3, %v809_v15, %v811_v55 }
  0x31   : > { %2736 = vmatmul.mubr.msk.f32.gmra.mxu1 %vm430_vm2, %v3140_v10  ;;  %2860 = vmatprep.subr.msk.mxu0 %vm463_vm0, %v3363_v59  ;;  %v3410_v31 = vsel %vm387_vm1, %v1728_v11, %v1730_v30  ;;  %v818_v53 = vrot.slane %v3150_v13, 2  ;;  %v3454_v5 = vsel %vm792_vm3, %v814_v62, %v816_v39  ;;  %v821_v11 = vrot.slane %v3183_v27, 2 }
  0x32   : > { %2738 = vmatprep.mubr.msk.f32.mxu1 %vm430_vm2, %v3196_v32  ;;  %v3443_v50 = vsel %vm792_vm3, %v813_v41, %v814_v62  ;;  %v823_v30 = vrot.slane %v3202_v34, 2  ;;  %v826_v15 = vrot.slane %v3232_v46, 2  ;;  %v828_v41 = vrot.slane %v3238_v48, 2 }
  0x33   : > { %2762 = vmatmul.mubr.msk.f32.gmra.mxu0 %vm430_vm2, %v3388_v20  ;;  %v3460_v22 = vsel %vm792_vm3, %v818_v53, %v819_v1  ;;  %v3471_v27 = vsel %vm792_vm3, %v819_v1, %v821_v11  ;;  %v829_v62 = vrot.slane %v3248_v51, 2  ;;  %v831_v39 = vrot.slane %v3261_v56, 2  ;;  %v2512_v56 = vld [vmem:[%s3993_s3 + $0x1c] sm:$0xf] }
  0x34   : > { %2764 = vmatprep.mubr.msk.f32.mxu0 %vm430_vm2, %v3396_v44  ;;  %v3477_v55 = vsel %vm792_vm3, %v823_v30, %v824_v37  ;;  %v3488_v46 = vsel %vm792_vm3, %v824_v37, %v826_v15 }
  0x35   : > { %2739 = vmatmul.mubr.msk.f32.gmra.mxu1 %vm430_vm2, %v3199_v33  ;;  %v3494_v53 = vsel %vm792_vm3, %v828_v41, %v829_v62  ;;  %v3503_v1 = vsel %vm792_vm3, %v829_v62, %v831_v39 }
  0x36   : > { %2741 = vmatprep.mubr.msk.f32.mxu1 %vm430_vm2, %v3223_v42 }
  0x37   : > { %2765 = vmatmul.mubr.msk.f32.gmra.mxu0 %vm430_vm2, %v3420_v54 }
  0x38   : > { %2767 = vmatprep.mubr.msk.f32.mxu0 %vm430_vm2, %v3426_v58 }
  0x39   : > { %2742 = vmatmul.mubr.msk.f32.gmra.mxu1 %vm430_vm2, %v3235_v47 }
  0x3a   : > { %2744 = vmatprep.mubr.msk.f32.mxu1 %vm430_vm2, %v3124_v3 }
  0x3b   : > { %2768 = vmatmul.mubr.msk.f32.gmra.mxu0 %vm430_vm2, %v3437_v60 }
  0x3c   : > { %2770 = vmatprep.mubr.msk.f32.mxu0 %vm430_vm2, %v3443_v50 }
  0x3d   : > { %2745 = vmatmul.mubr.msk.f32.gmra.mxu1 %vm430_vm2, %v3127_v4 }
  0x3e   : > { %2747 = vmatprep.mubr.msk.f32.mxu1 %vm430_vm2, %v3150_v13 }
  0x3f   : > { %2771 = vmatmul.mubr.msk.f32.gmra.mxu0 %vm430_vm2, %v3454_v5 }
  0x40   : > { %2773 = vmatprep.mubr.msk.f32.mxu0 %vm430_vm2, %v3460_v22 }
  0x41   : > { %2748 = vmatmul.mubr.msk.f32.gmra.mxu1 %vm430_vm2, %v3153_v14 }
  0x42   : > { %2750 = vmatprep.mubr.msk.f32.mxu1 %vm430_vm2, %v3202_v34 }
  0x43   : > { %2774 = vmatmul.mubr.msk.f32.gmra.mxu0 %vm430_vm2, %v3471_v27 }
  0x44   : > { %2776 = vmatprep.mubr.msk.f32.mxu0 %vm430_vm2, %v3477_v55 }
  0x45   : > { %2751 = vmatmul.mubr.msk.f32.gmra.mxu1 %vm430_vm2, %v3217_v40 }
  0x46   : > { %2753 = vmatprep.mubr.msk.f32.mxu1 %vm430_vm2, %v3238_v48 }
  0x47   : > { %2777 = vmatmul.mubr.msk.f32.gmra.mxu0 %vm430_vm2, %v3488_v46 }
  0x48   : > { %2779 = vmatprep.mubr.msk.f32.mxu0 %vm430_vm2, %v3494_v53 }
  0x49   : > { %2754 = vmatmul.mubr.msk.f32.gmra.mxu1 %vm430_vm2, %v3248_v51 }
  0x4a   : > { %2784 = vmatprep.mubr.msk.f32.mxu1 %vm430_vm2, %v3137_v9  ;;  %v2530_v9 = vld [vmem:[%s3993_s3 + $0x20] sm:$0xf] }
  0x4b   : > { %2780 = vmatmul.mubr.msk.f32.gmra.mxu0 %vm430_vm2, %v3503_v1 }
  0x4c   : > { %2810 = vmatprep.mubr.msk.f32.mxu0 %vm430_vm2, %v3188_v28 }
  0x4d   : > { %2785 = vmatmul.mubr.msk.f32.vlgmr.msra.gmra.mxu1 %vm430_vm2, %v3140_v10 }
  0x4e   : > { %2835 = vmatpush3.msk.msra.mxu1 %vm463_vm0, %v3345_v17  ;;  %2787 = vmatprep.mubr.msk.f32.mxu1 %vm430_vm2, %v3196_v32 }
  0x4f   : > { %2811 = vmatmul.mubr.msk.f32.vlgmr.msra.gmra.mxu0 %vm430_vm2, %v3244_v49  ;;  %2886 = vmatprep.subr.msk.mxu1 %vm463_vm0, %v2512_v56 }
  0x50   : > { %2861 = vmatpush3.msk.msra.mxu0 %vm463_vm0, %v3363_v59  ;;  %2813 = vmatprep.mubr.msk.f32.mxu0 %vm430_vm2, %v3266_v57 }
  0x51   : > { %2788 = vmatmul.mubr.msk.f32.gmra.mxu1 %vm430_vm2, %v3199_v33  ;;  %2912 = vmatprep.subr.msk.mxu0 %vm463_vm0, %v2530_v9 }
  0x52   : > { %2790 = vmatprep.mubr.msk.f32.mxu1 %vm430_vm2, %v3223_v42 }
  0x53   : > { %2814 = vmatmul.mubr.msk.f32.gmra.mxu0 %vm430_vm2, %v3289_v0 }
  0x54   : > { %2816 = vmatprep.mubr.msk.f32.mxu0 %vm430_vm2, %v3295_v2 }
  0x55   : > { %2791 = vmatmul.mubr.msk.f32.gmra.mxu1 %vm430_vm2, %v3235_v47 }
  0x56   : > { %2793 = vmatprep.mubr.msk.f32.mxu1 %vm430_vm2, %v3124_v3 }
  0x57   : > { %2817 = vmatmul.mubr.msk.f32.gmra.mxu0 %vm430_vm2, %v3310_v12 }
  0x58   : > { %2819 = vmatprep.mubr.msk.f32.mxu0 %vm430_vm2, %v3168_v19 }
  0x59   : > { %2794 = vmatmul.mubr.msk.f32.gmra.mxu1 %vm430_vm2, %v3127_v4 }
  0x5a   : > { %2796 = vmatprep.mubr.msk.f32.mxu1 %vm430_vm2, %v3150_v13 }
  0x5b   : > { %2820 = vmatmul.mubr.msk.f32.gmra.mxu0 %vm430_vm2, %v3173_v21 }
  0x5c   : > { %2822 = vmatprep.mubr.msk.f32.mxu0 %vm430_vm2, %v3191_v29 }
  0x5d   : > { %2797 = vmatmul.mubr.msk.f32.gmra.mxu1 %vm430_vm2, %v3153_v14 }
  0x5e   : > { %2799 = vmatprep.mubr.msk.f32.mxu1 %vm430_vm2, %v3202_v34 }
  0x5f   : > { %2823 = vmatmul.mubr.msk.f32.gmra.mxu0 %vm430_vm2, %v3227_v43 }
  0x60   : > { %2825 = vmatprep.mubr.msk.f32.mxu0 %vm430_vm2, %v3255_v52 }
  0x61   : > { %2800 = vmatmul.mubr.msk.f32.gmra.mxu1 %vm430_vm2, %v3217_v40 }
  0x62   : > { %2802 = vmatprep.mubr.msk.f32.mxu1 %vm430_vm2, %v3238_v48 }
  0x63   : > { %2826 = vmatmul.mubr.msk.f32.gmra.mxu0 %vm430_vm2, %v3278_v61 }
  0x64   : > { %2828 = vmatprep.mubr.msk.f32.mxu0 %vm430_vm2, %v3284_v63 }
  0x65   : > { %2803 = vmatmul.mubr.msk.f32.gmra.mxu1 %vm430_vm2, %v3248_v51 }
  0x66   : > { %2805 = vmatprep.mubr.msk.f32.mxu1 %vm430_vm2, %v3315_v24 }
  0x67   : > { %2829 = vmatmul.mubr.msk.f32.gmra.mxu0 %vm430_vm2, %v3302_v8 }
  0x68   : > { %2831 = vmatprep.mubr.msk.f32.mxu0 %vm430_vm2, %v3366_v18 }
  0x69   : > { %2806 = vmatmul.mubr.msk.f32.gmra.mxu1 %vm430_vm2, %v3321_v25 }
  0x6a   : > { %2836 = vmatprep.mubr.msk.f32.mxu1 %vm430_vm2, %v3339_v38 }
  0x6b   : > { %2832 = vmatmul.mubr.msk.f32.gmra.mxu0 %vm430_vm2, %v3376_v16 }
  0x6c   : > { %2862 = vmatprep.mubr.msk.f32.mxu0 %vm430_vm2, %v3196_v32 }
  0x6d   : > { %2837 = vmatmul.mubr.msk.f32.vlgmr.msra.gmra.mxu1 %vm430_vm2, %v3388_v20 }
  0x6e   : > { %2887 = vmatpush3.msk.msra.mxu1 %vm463_vm0, %v2512_v56  ;;  %2839 = vmatprep.mubr.msk.f32.mxu1 %vm430_vm2, %v3396_v44 }
  0x6f   : > { %2863 = vmatmul.mubr.msk.f32.vlgmr.msra.gmra.mxu0 %vm430_vm2, %v3199_v33 }
  0x70   : > { %2913 = vmatpush3.msk.msra.mxu0 %vm463_vm0, %v2530_v9  ;;  %2865 = vmatprep.mubr.msk.f32.mxu0 %vm430_vm2, %v3223_v42 }
  0x71   : > { %2840 = vmatmul.mubr.msk.f32.gmra.mxu1 %vm430_vm2, %v3420_v54 }
  0x72   : > { %2842 = vmatprep.mubr.msk.f32.mxu1 %vm430_vm2, %v3426_v58 }
  0x73   : > { %2866 = vmatmul.mubr.msk.f32.gmra.mxu0 %vm430_vm2, %v3235_v47 }
  0x74   : > { %2868 = vmatprep.mubr.msk.f32.mxu0 %vm430_vm2, %v3124_v3 }
  0x75   : > { %2843 = vmatmul.mubr.msk.f32.gmra.mxu1 %vm430_vm2, %v3437_v60 }
  0x76   : > { %2845 = vmatprep.mubr.msk.f32.mxu1 %vm430_vm2, %v3443_v50 }
  0x77   : > { %2869 = vmatmul.mubr.msk.f32.gmra.mxu0 %vm430_vm2, %v3127_v4 }
  0x78   : > { %2871 = vmatprep.mubr.msk.f32.mxu0 %vm430_vm2, %v3150_v13 }
  0x79   : > { %2846 = vmatmul.mubr.msk.f32.gmra.mxu1 %vm430_vm2, %v3454_v5 }
  0x7a   : > { %2848 = vmatprep.mubr.msk.f32.mxu1 %vm430_vm2, %v3460_v22 }
  0x7b   : > { %2872 = vmatmul.mubr.msk.f32.gmra.mxu0 %vm430_vm2, %v3153_v14 }
  0x7c   : > { %2874 = vmatprep.mubr.msk.f32.mxu0 %vm430_vm2, %v3202_v34 }
  0x7d   : > { %2849 = vmatmul.mubr.msk.f32.gmra.mxu1 %vm430_vm2, %v3471_v27 }
  0x7e   : > { %2851 = vmatprep.mubr.msk.f32.mxu1 %vm430_vm2, %v3477_v55 }
  0x7f   : > { %2875 = vmatmul.mubr.msk.f32.gmra.mxu0 %vm430_vm2, %v3217_v40 }
  0x80   : > { %2877 = vmatprep.mubr.msk.f32.mxu0 %vm430_vm2, %v3238_v48 }
  0x81   : > { %2852 = vmatmul.mubr.msk.f32.gmra.mxu1 %vm430_vm2, %v3488_v46 }
  0x82   : > { %2854 = vmatprep.mubr.msk.f32.mxu1 %vm430_vm2, %v3494_v53 }
  0x83   : > { %2878 = vmatmul.mubr.msk.f32.gmra.mxu0 %vm430_vm2, %v3248_v51 }
  0x84   : > { %2880 = vmatprep.mubr.msk.f32.mxu0 %vm430_vm2, %v3315_v24 }
  0x85   : > { %2855 = vmatmul.mubr.msk.f32.gmra.mxu1 %vm430_vm2, %v3503_v1 }
  0x86   : > { %2857 = vmatprep.mubr.msk.f32.mxu1 %vm430_vm2, %v3379_v7 }
  0x87   : > { %2881 = vmatmul.mubr.msk.f32.gmra.mxu0 %vm430_vm2, %v3321_v25 }
  0x88   : > { %2883 = vmatprep.mubr.msk.f32.mxu0 %vm430_vm2, %v3349_v45 }
  0x89   : > { %2858 = vmatmul.mubr.msk.f32.gmra.mxu1 %vm430_vm2, %v3391_v26 }
  0x8a   : > { %2888 = vmatprep.mubr.msk.f32.mxu1 %vm430_vm2, %v3266_v57 }
  0x8b   : > { %2884 = vmatmul.mubr.msk.f32.gmra.mxu0 %vm430_vm2, %v3370_v6 }
  0x8c   : > { %2914 = vmatprep.mubr.msk.f32.mxu0 %vm430_vm2, %v3396_v44 }
  0x8d   : > { %2889 = vmatmul.mubr.msk.f32.vlgmr.msra.gmra.mxu1 %vm430_vm2, %v3289_v0 }
  0x8e   : > { %2891 = vmatprep.mubr.msk.f32.mxu1 %vm430_vm2, %v3295_v2 }
  0x8f   : > { %2915 = vmatmul.mubr.msk.f32.vlgmr.msra.gmra.mxu0 %vm430_vm2, %v3420_v54 }
  0x90   : > { %2917 = vmatprep.mubr.msk.f32.mxu0 %vm430_vm2, %v3426_v58 }
  0x91   : > { %2892 = vmatmul.mubr.msk.f32.gmra.mxu1 %vm430_vm2, %v3310_v12 }
  0x92   : > { %2894 = vmatprep.mubr.msk.f32.mxu1 %vm430_vm2, %v3168_v19 }
  0x93   : > { %2918 = vmatmul.mubr.msk.f32.gmra.mxu0 %vm430_vm2, %v3437_v60 }
  0x94   : > { %2920 = vmatprep.mubr.msk.f32.mxu0 %vm430_vm2, %v3443_v50 }
  0x95   : > { %2895 = vmatmul.mubr.msk.f32.gmra.mxu1 %vm430_vm2, %v3173_v21 }
  0x96   : > { %2897 = vmatprep.mubr.msk.f32.mxu1 %vm430_vm2, %v3191_v29 }
  0x97   : > { %2921 = vmatmul.mubr.msk.f32.gmra.mxu0 %vm430_vm2, %v3454_v5 }
  0x98   : > { %2923 = vmatprep.mubr.msk.f32.mxu0 %vm430_vm2, %v3460_v22 }
  0x99   : > { %2898 = vmatmul.mubr.msk.f32.gmra.mxu1 %vm430_vm2, %v3227_v43 }
  0x9a   : > { %2900 = vmatprep.mubr.msk.f32.mxu1 %vm430_vm2, %v3255_v52 }
  0x9b   : > { %2924 = vmatmul.mubr.msk.f32.gmra.mxu0 %vm430_vm2, %v3471_v27 }
  0x9c   : > { %2926 = vmatprep.mubr.msk.f32.mxu0 %vm430_vm2, %v3477_v55 }
  0x9d   : > { %2901 = vmatmul.mubr.msk.f32.gmra.mxu1 %vm430_vm2, %v3278_v61 }
  0x9e   : > { %2903 = vmatprep.mubr.msk.f32.mxu1 %vm430_vm2, %v3284_v63 }
  0x9f   : > { %2927 = vmatmul.mubr.msk.f32.gmra.mxu0 %vm430_vm2, %v3488_v46 }
  0xa0   : > { %2929 = vmatprep.mubr.msk.f32.mxu0 %vm430_vm2, %v3494_v53 }
  0xa1   : > { %2904 = vmatmul.mubr.msk.f32.gmra.mxu1 %vm430_vm2, %v3302_v8 }
  0xa2   : > { %2906 = vmatprep.mubr.msk.f32.mxu1 %vm430_vm2, %v3366_v18 }
  0xa3   : > { %2930 = vmatmul.mubr.msk.f32.gmra.mxu0 %vm430_vm2, %v3503_v1 }
  0xa4   : > { %2932 = vmatprep.mubr.msk.f32.mxu0 %vm430_vm2, %v3379_v7 }
  0xa5   : > { %2907 = vmatmul.mubr.msk.f32.gmra.mxu1 %vm430_vm2, %v3376_v16 }
  0xa6   : > { %2909 = vmatprep.mubr.msk.f32.mxu1 %vm430_vm2, %v3402_v35 }
  0xa7   : > { %2933 = vmatmul.mubr.msk.f32.gmra.mxu0 %vm430_vm2, %v3391_v26 }
  0xa8   : > { %2935 = vmatprep.mubr.msk.f32.mxu0 %vm430_vm2, %v3405_v23 }
  0xa9   : > { %2910 = vmatmul.mubr.msk.f32.gmra.mxu1 %vm430_vm2, %v3410_v31 }
  0xab   : > { %2936 = vmatmul.mubr.msk.f32.gmra.mxu0 %vm430_vm2, %v3413_v36 }
  0xdc   : > { %v2720_v3 = vpop.f32.mrf.mxu1 }
  0xde   : > { %v573_v4 = vpop.f32.mrf.mxu1 }
  0xdf   : > { %v2708_v10 = vpop.f32.mrf.mxu0 }
  0xe1   : > { %v533_v13 = vpop.f32.mrf.mxu0  ;;  %v2723_v14 = vpop.f32.mrf.mxu1 }
  0xe3   : > { %v2711_v32 = vpop.f32.mrf.mxu0  ;;  %v583_v33 = vpop.f32.mrf.mxu1 }
  0xe5   : > { %v543_v34 = vpop.f32.mrf.mxu0  ;;  %v2726_v40 = vpop.f32.mrf.mxu1 }
  0xe7   : > { %v2714_v42 = vpop.f32.mrf.mxu0  ;;  %v593_v47 = vpop.f32.mrf.mxu1 }
  0xe9   : > { %v553_v48 = vpop.f32.mrf.mxu0  ;;  %v2729_v51 = vpop.f32.mrf.mxu1 }
  0xeb   : > { %v2717_v24 = vpop.f32.mrf.mxu0  ;;  %v3715_v25 = vpop.f32.mrf.mxu1 }
  0xed   : > { %v563_v38 = vpop.f32.mrf.mxu0  ;;  %v2734_v17 = vpop.f32.mrf.mxu1 }
  0xee   : > { %v719_v45 = vadd.f32 %v2734_v17, %v2708_v10 }
  0xef   : > { %v2760_v59 = vpop.f32.mrf.mxu0  ;;  %v713_v6 = vpop.f32.mrf.mxu1 }
  0xf0   : > { %v3717_v7 = vadd.f32 %v2760_v59, %v719_v45  ;;  %v714_v20 = vadd.f32 %v713_v6, %v533_v13 }
  0xf1   : > { %v936_v26 = vpop.f32.mrf.mxu0  ;;  %v2737_v44 = vpop.f32.mrf.mxu1 }
  0xf2   : > { %v3719_v35 = vadd.f32 %v936_v26, %v714_v20  ;;  %v729_v23 = vadd.f32 %v2737_v44, %v2711_v32 }
  0xf3   : > { %v2763_v31 = vpop.f32.mrf.mxu0  ;;  %v723_v36 = vpop.f32.mrf.mxu1 }
  0xf4   : > { %v3721_v54 = vadd.f32 %v2763_v31, %v729_v23  ;;  %v724_v58 = vadd.f32 %v723_v36, %v543_v34 }
  0xf5   : > { %v946_v60 = vpop.f32.mrf.mxu0  ;;  %v2740_v50 = vpop.f32.mrf.mxu1 }
  0xf6   : > { %v3723_v5 = vadd.f32 %v946_v60, %v724_v58  ;;  %v739_v11 = vadd.f32 %v2740_v50, %v2714_v42 }
  0xf7   : > { %v2766_v22 = vpop.f32.mrf.mxu0  ;;  %v733_v30 = vpop.f32.mrf.mxu1 }
  0xf8   : > { %v3725_v37 = vadd.f32 %v2766_v22, %v739_v11  ;;  %v734_v27 = vadd.f32 %v733_v30, %v553_v48 }
  0xf9   : > { %v956_v15 = vpop.f32.mrf.mxu0  ;;  %v2743_v55 = vpop.f32.mrf.mxu1 }
  0xfa   : > { %v3727_v41 = vadd.f32 %v956_v15, %v734_v27  ;;  %v749_v62 = vadd.f32 %v2743_v55, %v2717_v24 }
  0xfb   : > { %v2769_v46 = vpop.f32.mrf.mxu0  ;;  %v743_v39 = vpop.f32.mrf.mxu1 }
  0xfc   : > { %v3729_v53 = vadd.f32 %v2769_v46, %v749_v62  ;;  %v744_v1 = vadd.f32 %v743_v39, %v563_v38 }
  0xfd   : > { %v966_v56 = vpop.f32.mrf.mxu0  ;;  %v2746_v9 = vpop.f32.mrf.mxu1 }
  0xfe   : > { %v3731_v10 = vadd.f32 %v966_v56, %v744_v1  ;;  %v759_v13 = vadd.f32 %v2746_v9, %v2720_v3 }
  0xff   : > { %v2772_v32 = vpop.f32.mrf.mxu0  ;;  %v753_v34 = vpop.f32.mrf.mxu1 }
 0x100   : > { %v3733_v42 = vadd.f32 %v2772_v32, %v759_v13  ;;  %v754_v48 = vadd.f32 %v753_v34, %v573_v4 }
 0x101   : > { %v976_v17 = vpop.f32.mrf.mxu0  ;;  %v2749_v45 = vpop.f32.mrf.mxu1 }
 0x102   : > { %v3735_v59 = vadd.f32 %v976_v17, %v754_v48  ;;  %v769_v24 = vadd.f32 %v2749_v45, %v2723_v14 }
 0x103   : > { %v2775_v6 = vpop.f32.mrf.mxu0  ;;  %v763_v20 = vpop.f32.mrf.mxu1 }
 0x104   : > { %v3737_v26 = vadd.f32 %v2775_v6, %v769_v24  ;;  %v764_v38 = vadd.f32 %v763_v20, %v583_v33 }
 0x105   : > { %v986_v44 = vpop.f32.mrf.mxu0  ;;  %v2752_v23 = vpop.f32.mrf.mxu1 }
 0x106   : > { %v3739_v31 = vadd.f32 %v986_v44, %v764_v38  ;;  %v779_v3 = vadd.f32 %v2752_v23, %v2726_v40 }
 0x107   : > { %v2778_v36 = vpop.f32.mrf.mxu0  ;;  %v773_v58 = vpop.f32.mrf.mxu1 }
 0x108   : > { %v3741_v60 = vadd.f32 %v2778_v36, %v779_v3  ;;  %v774_v4 = vadd.f32 %v773_v58, %v593_v47 }
 0x109   : > { %v996_v50 = vpop.f32.mrf.mxu0  ;;  %v2755_v11 = vpop.f32.mrf.mxu1 }
 0x10a   : > { %v3743_v22 = vadd.f32 %v996_v50, %v774_v4  ;;  %v789_v14 = vadd.f32 %v2755_v11, %v2729_v51 }
 0x10b   : > { %v2781_v30 = vpop.f32.mrf.mxu0  ;;  %v783_v27 = vpop.f32.mrf.mxu1 }
 0x10c   : > { %4028 = vst [vmem:[#allocation18_spill] sm:$0xff] %v3743_v22  ;;  %v3745_v15 = vadd.f32 %v2781_v30, %v789_v14  ;;  %v784_v33 = vadd.f32 %v783_v27, %v3715_v25 }
 0x10d   : > { %v1006_v55 = vpop.f32.mrf.mxu0  ;;  %v2786_v62 = vpop.f32.mrf.mxu1 }
 0x10e   : > { %4029 = vst [vmem:[#allocation19_spill] sm:$0xff] %v3745_v15  ;;  %v3748_v46 = vadd.f32 %v1006_v55, %v784_v33 }
 0x10f   : > { %v2812_v40 = vpop.f32.mrf.mxu0  ;;  %v1108_v39 = vpop.f32.mrf.mxu1 }
 0x110   : > { %4030 = vst [vmem:[#allocation20_spill] sm:$0xff] %v3748_v46  ;;  %v1187_v22 = vadd.f32 %v1108_v39, %v3719_v35 }
 0x111   : > { %v1284_v1 = vpop.f32.mrf.mxu0  ;;  %v2789_v56 = vpop.f32.mrf.mxu1 }
 0x113   : > { %v3750_v47 = vpop.f32.mrf.mxu0  ;;  %v1118_v9 = vpop.f32.mrf.mxu1 }
 0x115   : > { %v3752_v13 = vpop.f32.mrf.mxu0  ;;  %v2792_v51 = vpop.f32.mrf.mxu1 }
 0x116   : > { %v1192_v39 = vadd.f32 %v2792_v51, %v3725_v37 }
 0x117   : > { %v3754_v32 = vpop.f32.mrf.mxu0  ;;  %v1128_v34 = vpop.f32.mrf.mxu1 }
 0x118   : > { %v1368_v37 = vadd.f32 %v3754_v32, %v1192_v39 }
 0x119   : > { %v3756_v48 = vpop.f32.mrf.mxu0  ;;  %v3758_v25 = vpop.f32.mrf.mxu1 }
 0x11b   : > { %v3760_v17 = vpop.f32.mrf.mxu0  ;;  %v3762_v45 = vpop.f32.mrf.mxu1 }
 0x11d   : > { %v3764_v24 = vpop.f32.mrf.mxu0  ;;  %v3766_v6 = vpop.f32.mrf.mxu1 }
 0x11f   : > { %v3768_v20 = vpop.f32.mrf.mxu0  ;;  %v3770_v38 = vpop.f32.mrf.mxu1 }
 0x121   : > { %v3772_v44 = vpop.f32.mrf.mxu0  ;;  %v3774_v23 = vpop.f32.mrf.mxu1 }
 0x123   : > { %v3776_v3 = vpop.f32.mrf.mxu0  ;;  %v3778_v36 = vpop.f32.mrf.mxu1 }
 0x125   : > { %v3780_v58 = vpop.f32.mrf.mxu0  ;;  %v3782_v4 = vpop.f32.mrf.mxu1 }
 0x126   : > { %4031 = vst [vmem:[#allocation21_spill] sm:$0xff] %v3780_v58 }
 0x127   : > { %v3784_v50 = vpop.f32.mrf.mxu0  ;;  %v3786_v11 = vpop.f32.mrf.mxu1 }
 0x128   : > { %4032 = vst [vmem:[#allocation22_spill] sm:$0xff] %v3784_v50  ;;  %4033 = vst [vmem:[#allocation23_spill] sm:$0xff] %v3786_v11 }
 0x129   : > { %v3788_v14 = vpop.f32.mrf.mxu0  ;;  %v3790_v30 = vpop.f32.mrf.mxu1 }
 0x12a   : > { %4034 = vst [vmem:[#allocation24_spill] sm:$0xff] %v3788_v14  ;;  %4035 = vst [vmem:[#allocation25_spill] sm:$0xff] %v3790_v30  ;;  %v1188_v30 = vadd.f32 %v2786_v62, %v3717_v7  ;;  %v1363_v7 = vadd.f32 %v1284_v1, %v1187_v22 }
 0x12b   : > { %v3792_v27 = vpop.f32.mrf.mxu0  ;;  %v3794_v33 = vpop.f32.mrf.mxu1 }
 0x12c   : > { %4036 = vst [vmem:[#allocation26_spill] sm:$0xff] %v3792_v27  ;;  %4037 = vst [vmem:[#allocation27_spill] sm:$0xff] %v3794_v33 }
 0x12d   : > { %v3796_v55 = vpop.f32.mrf.mxu0  ;;  %v2838_v16 = vpop.f32.mrf.mxu1 }
 0x12e   : > { %4038 = vst [vmem:[#allocation28_spill] sm:$0xff] %v3796_v55 }
 0x12f   : > { %v2864_v18 = vpop.f32.mrf.mxu0  ;;  %v1459_v8 = vpop.f32.mrf.mxu1 }
 0x131   : > { %v1631_v63 = vpop.f32.mrf.mxu0  ;;  %v2841_v61 = vpop.f32.mrf.mxu1 }
 0x133   : > { %v2867_v52 = vpop.f32.mrf.mxu0  ;;  %v1469_v43 = vpop.f32.mrf.mxu1 }
 0x135   : > { %v1641_v29 = vpop.f32.mrf.mxu0  ;;  %v2844_v21 = vpop.f32.mrf.mxu1 }
 0x137   : > { %v3798_v19 = vpop.f32.mrf.mxu0  ;;  %v1479_v12 = vpop.f32.mrf.mxu1 }
 0x139   : > { %v3800_v2 = vpop.f32.mrf.mxu0  ;;  %v2847_v0 = vpop.f32.mrf.mxu1 }
 0x13b   : > { %v3802_v57 = vpop.f32.mrf.mxu0  ;;  %v3804_v49 = vpop.f32.mrf.mxu1 }
 0x13d   : > { %v3806_v28 = vpop.f32.mrf.mxu0  ;;  %v3808_v55 = vpop.f32.mrf.mxu1 }
 0x13e   : > { %4039 = vst [vmem:[#allocation29_spill] sm:$0xff] %v3806_v28  ;;  %v1364_v28 = vadd.f32 %v2812_v40, %v1188_v30 }
 0x13f   : > { %v3810_v33 = vpop.f32.mrf.mxu0  ;;  %v3812_v46 = vpop.f32.mrf.mxu1 }
 0x140   : > { %4040 = vst [vmem:[#allocation30_spill] sm:$0xff] %v3810_v33  ;;  %4041 = vst [vmem:[#allocation31_spill] sm:$0xff] %v3812_v46  ;;  %v1190_v33 = vadd.f32 %v2789_v56, %v3721_v54  ;;  %v1189_v46 = vadd.f32 %v1118_v9, %v3723_v5  ;;  %v1539_v62 = vadd.f32 %v2838_v16, %v1364_v28 }
 0x141   : > { %v3814_v27 = vpop.f32.mrf.mxu0  ;;  %v3816_v14 = vpop.f32.mrf.mxu1  ;;  %v1191_v54 = vadd.f32 %v1128_v34, %v3727_v41  ;;  %v1194_v28 = vadd.f32 %v3758_v25, %v3729_v53  ;;  %v1193_v41 = vadd.f32 %v3762_v45, %v3731_v10 }
 0x142   : > { %4042 = vst [vmem:[#allocation32_spill] sm:$0xff] %v3814_v27  ;;  %4043 = vst [vmem:[#allocation33_spill] sm:$0xff] %v3816_v14  ;;  %v1366_v35 = vadd.f32 %v3750_v47, %v1190_v33  ;;  %v1365_v40 = vadd.f32 %v3752_v13, %v1189_v46  ;;  %v1711_v9 = vadd.f32 %v2864_v18, %v1539_v62 }
 0x143   : > { %v3819_v15 = vpop.f32.mrf.mxu0  ;;  %v3821_v11 = vpop.f32.mrf.mxu1  ;;  %v1367_v46 = vadd.f32 %v3756_v48, %v1191_v54  ;;  %v1543_v18 = vadd.f32 %v2844_v21, %v1368_v37  ;;  %v1370_v32 = vadd.f32 %v3760_v17, %v1194_v28  ;;  %v1369_v62 = vadd.f32 %v3764_v24, %v1193_v41 }
 0x144   : > { %4044 = vst [vmem:[#allocation34_spill] sm:$0xff] %v3819_v15  ;;  %4045 = vst [vmem:[#allocation35_spill] sm:$0xff] %v3821_v11  ;;  %v1541_v22 = vadd.f32 %v2841_v61, %v1366_v35  ;;  %v1540_v16 = vadd.f32 %v1469_v43, %v1365_v40  ;;  %v3857_v61 = vld [vmem:[%s3994_s4] ss:$0 sm:$0xff]  ;;  %v1195_v21 = vadd.f32 %v3770_v38, %v3735_v59 }
 0x145   : > { %v3824_v50 = vpop.f32.mrf.mxu0  ;;  %v3826_v58 = vpop.f32.mrf.mxu1  ;;  %v1542_v10 = vadd.f32 %v1479_v12, %v1367_v46  ;;  %v1715_v17 = vadd.f32 %v3798_v19, %v1543_v18  ;;  %v1198_v40 = vadd.f32 %v3774_v23, %v3737_v26  ;;  %v1200_v26 = vadd.f32 %v3782_v4, %v3741_v60  ;;  %v4048_v60 = vld [vmem:[#allocation29_spill] sm:$0xff]  ;;  %v4050_v18 = vld [vmem:[#allocation22_spill] sm:$0xff] }
 0x146   : > { %4046 = vst [vmem:[#allocation36_spill] sm:$0xff] %v3824_v50  ;;  %v1538_v50 = vadd.f32 %v1459_v8, %v1363_v7  ;;  %v1713_v43 = vadd.f32 %v2867_v52, %v1541_v22  ;;  %v1712_v48 = vadd.f32 %v1641_v29, %v1540_v16  ;;  %v1545_v52 = vadd.f32 %v2847_v0, %v1370_v32 }
 0x147   : > { %v3830_v27 = vpop.f32.mrf.mxu0  ;;  %v3832_v14 = vpop.f32.mrf.mxu1  ;;  %v1714_v22 = vadd.f32 %v3800_v2, %v1542_v10  ;;  %v1544_v0 = vadd.f32 %v3804_v49, %v1369_v62  ;;  %v1371_v19 = vadd.f32 %v3772_v44, %v1195_v21 }
 0x148   : > { %v1710_v8 = vadd.f32 %v1631_v63, %v1538_v50  ;;  %v1196_v63 = vadd.f32 %v3766_v6, %v3733_v42  ;;  %v1717_v23 = vadd.f32 %v3802_v57, %v1545_v52 }
 0x149   : > { %v3834_v15 = vpop.f32.mrf.mxu0  ;;  %v3836_v11 = vpop.f32.mrf.mxu1  ;;  %v1716_v4 = vadd.f32 %v4048_v60, %v1544_v0  ;;  %v4059_v0 = vld [vmem:[#allocation24_spill] sm:$0xff] }
 0x14a   : > { %v1372_v12 = vadd.f32 %v3768_v20, %v1196_v63  ;;  %v1197_v20 = vadd.f32 %v3778_v36, %v3739_v31  ;;  %v4053_v63 = vld [vmem:[#allocation19_spill] sm:$0xff] }
 0x14b   : > { %v3842_v5 = vpop.f32.mrf.mxu0  ;;  %v3844_v56 = vpop.f32.mrf.mxu1 }
 0x14c   : > { %v1547_v2 = vadd.f32 %v3808_v55, %v1372_v12 }
 0x14d   : > { %v3848_v1 = vpop.f32.mrf.mxu0  ;;  %v2890_v47 = vpop.f32.mrf.mxu1 }
 0x14e   : > { %v1887_v51 = vadd.f32 %v2890_v47, %v1711_v9 }
 0x14f   : > { %v2916_v13 = vpop.f32.mrf.mxu0  ;;  %v1807_v34 = vpop.f32.mrf.mxu1 }
 0x150   : > { %v2062_v53 = vadd.f32 %v2916_v13, %v1887_v51  ;;  %v1886_v25 = vadd.f32 %v1807_v34, %v1710_v8  ;;  %v1374_v8 = vadd.f32 %v3776_v3, %v1198_v40  ;;  %v4047_v51 = vld [vmem:[#allocation31_spill] sm:$0xff]  ;;  %v4049_v34 = vld [vmem:[#allocation21_spill] sm:$0xff] }
 0x151   : > { %v1982_v50 = vpop.f32.mrf.mxu0  ;;  %v2893_v30 = vpop.f32.mrf.mxu1  ;;  %v1546_v44 = vadd.f32 %v4047_v51, %v1371_v19  ;;  %v4052_v3 = vld [vmem:[#allocation23_spill] sm:$0xff]  ;;  %v4064_v51 = vld [vmem:[#allocation36_spill] sm:$0xff] }
 0x152   : > { %v2061_v45 = vadd.f32 %v1982_v50, %v1886_v25  ;;  %v1889_v33 = vadd.f32 %v2893_v30, %v1713_v43  ;;  %v2085_v7 = vadd.f32 %v3857_v61, %v2062_v53  ;;  %v1373_v43 = vadd.f32 %v4049_v34, %v1197_v20  ;;  %v4051_v25 = vld [vmem:[#allocation18_spill] sm:$0xff]  ;;  %v4061_v20 = vld [vmem:[#allocation20_spill] sm:$0xff] }
 0x153   : > { %v1817_v35 = vpop.f32.mrf.mxu1  ;;  %v2919_v39 = vpop.f32.mrf.mxu0  ;;  %v1376_v53 = vadd.f32 %v4050_v18, %v1200_v26  ;;  %v1199_v32 = vadd.f32 %v4052_v3, %v4051_v25  ;;  %v4062_v26 = vld [vmem:[#allocation27_spill] sm:$0xff] }
 0x154   : > { %v2084_v42 = vadd.f32 %v3857_v61, %v2061_v45  ;;  %v1888_v29 = vadd.f32 %v1817_v35, %v1712_v48  ;;  %v2101_v6 = vmax.f32 %v2085_v7, 0.0  ;;  %v2064_v54 = vadd.f32 %v2919_v39, %v1889_v33  ;;  %v4054_v48 = vld [vmem:[#allocation25_spill] sm:$0xff]  ;;  %v4055_v45 = vld [vmem:[#allocation30_spill] sm:$0xff]  ;;  %v4057_v35 = vld [vmem:[#allocation32_spill] sm:$0xff] }
 0x155   : > { %v2896_v9 = vpop.f32.mrf.mxu1  ;;  %v1992_v24 = vpop.f32.mrf.mxu0  ;;  %v1202_v50 = vadd.f32 %v4054_v48, %v4053_v63  ;;  %v1719_v33 = vadd.f32 %v4055_v45, %v1547_v2  ;;  %v4056_v7 = vld [vmem:[#allocation33_spill] sm:$0xff]  ;;  %v1718_v39 = vadd.f32 %v4057_v35, %v1546_v44 }
 0x156   : > { %v1891_v59 = vadd.f32 %v2896_v9, %v1715_v17  ;;  %v2063_v38 = vadd.f32 %v1992_v24, %v1888_v29  ;;  %2150 = vrot.lane.b32.xlu0 %v2101_v6, %s3025_s27  ;;  %v2100_v49 = vmax.f32 %v2084_v42, 0.0  ;;  %v2087_v46 = vadd.f32 %v3857_v61, %v2064_v54  ;;  %v4058_v17 = vld [vmem:[#allocation35_spill] sm:$0xff] }
 0x157   : > { %v1827_v28 = vpop.f32.mrf.mxu1  ;;  %v2922_v16 = vpop.f32.mrf.mxu0  ;;  %v1549_v62 = vadd.f32 %v4056_v7, %v1374_v8  ;;  %v1548_v42 = vadd.f32 %v4058_v17, %v1373_v43 }
 0x158   : > { %v1890_v47 = vadd.f32 %v1827_v28, %v1714_v22  ;;  %v2086_v37 = vadd.f32 %v3857_v61, %v2063_v38  ;;  %v2066_v31 = vadd.f32 %v2922_v16, %v1891_v59  ;;  %v2103_v29 = vmax.f32 %v2087_v46, 0.0  ;;  %v4060_v38 = vld [vmem:[#allocation26_spill] sm:$0xff] }
 0x159   : > { %v2899_v36 = vpop.f32.mrf.mxu1  ;;  %v2002_v41 = vpop.f32.mrf.mxu0  ;;  %v1375_v59 = vadd.f32 %v4059_v0, %v1199_v32  ;;  %v1378_v19 = vadd.f32 %v4060_v38, %v1202_v50  ;;  %v1551_v28 = vadd.f32 %v3826_v58, %v1376_v53  ;;  %v1720_v44 = vadd.f32 %v4064_v51, %v1548_v42  ;;  %v4067_v51 = vld [vmem:[#allocation7_spill] sm:$0xff] }
 0x15a   : > { %v1893_v57 = vadd.f32 %v2899_v36, %v1717_v23  ;;  %v2065_v13 = vadd.f32 %v2002_v41, %v1890_v47  ;;  %2148 = vrot.lane.b32.xlu0 %v2100_v49, %s3025_s27  ;;  %v2102_v55 = vmax.f32 %v2086_v37, 0.0  ;;  %v2089_v6 = vadd.f32 %v3857_v61, %v2066_v31  ;;  %v4063_v49 = vld [vmem:[#allocation34_spill] sm:$0xff] }
 0x15b   : > { %v1837_v30 = vpop.f32.mrf.mxu1  ;;  %v2925_v10 = vpop.f32.mrf.mxu0  ;;  %v1201_v23 = vadd.f32 %v4062_v26, %v4061_v20  ;;  %v1721_v47 = vadd.f32 %v4063_v49, %v1549_v62  ;;  %v1550_v46 = vadd.f32 %v3832_v14, %v1375_v59  ;;  %v1723_v43 = vadd.f32 %v3830_v27, %v1551_v28 }
 0x15c   : > { %v2088_v21 = vadd.f32 %v3857_v61, %v2065_v13  ;;  %v1892_v52 = vadd.f32 %v1837_v30, %v1716_v4  ;;  %2152 = vrot.lane.b32.xlu1 %v2102_v55, %s3025_s27  ;;  %v2068_v9 = vadd.f32 %v2925_v10, %v1893_v57  ;;  %v2105_v31 = vmax.f32 %v2089_v6, 0.0  ;;  %v4065_v55 = vld [vmem:[#allocation28_spill] sm:$0xff] }
 0x15d   : > { %v2902_v12 = vpop.f32.mrf.mxu1  ;;  %v2012_v40 = vpop.f32.mrf.mxu0  ;;  %v1377_v34 = vadd.f32 %v4065_v55, %v1201_v23  ;;  %v1553_v25 = vadd.f32 %v3836_v11, %v1378_v19  ;;  %v1722_v32 = vadd.f32 %v3834_v15, %v1550_v46 }
 0x15e   : > { %v2104_v54 = vmax.f32 %v2088_v21, 0.0  ;;  %v1895_v24 = vadd.f32 %v2902_v12, %v1719_v33  ;;  %v2067_v22 = vadd.f32 %v2012_v40, %v1892_v52  ;;  %v2091_v58 = vadd.f32 %v3857_v61, %v2068_v9 }
 0x15f   : > { %v1847_v16 = vpop.f32.mrf.mxu1  ;;  %v2928_v2 = vpop.f32.mrf.mxu0  ;;  %v1552_v63 = vadd.f32 %v3844_v56, %v1377_v34  ;;  %v1725_v21 = vadd.f32 %v3842_v5, %v1553_v25  ;;  %v4073_v25 = vld [vmem:[#allocation3_spill] sm:$0xff] }
 0x160   : > { %v2090_v37 = vadd.f32 %v3857_v61, %v2067_v22  ;;  %v1894_v8 = vadd.f32 %v1847_v16, %v1718_v39  ;;  %2154 = vrot.lane.b32.xlu1 %v2103_v29, %s3025_s27  ;;  %2156 = vrot.lane.b32.xlu0 %v2104_v54, %s3025_s27  ;;  %v2070_v36 = vadd.f32 %v2928_v2, %v1895_v24  ;;  %v2107_v10 = vmax.f32 %v2091_v58, 0.0  ;;  %v4070_v58 = vld [vmem:[#allocation13_spill] sm:$0xff] }
 0x161   : > { %v2905_v41 = vpop.f32.mrf.mxu1  ;;  %v2022_v60 = vpop.f32.mrf.mxu0  ;;  %v1724_v15 = vadd.f32 %v3848_v1, %v1552_v63 }
 0x162   : > { %v2106_v4 = vmax.f32 %v2090_v37, 0.0  ;;  %v1897_v57 = vadd.f32 %v2905_v41, %v1721_v47  ;;  %v2069_v13 = vadd.f32 %v2022_v60, %v1894_v8  ;;  %v2093_v48 = vadd.f32 %v3857_v61, %v2070_v36  ;;  %v4066_v47 = vld [vmem:[#allocation4_spill] sm:$0xff] }
 0x163   : > { %v1857_v18 = vpop.f32.mrf.mxu1  ;;  %v2931_v53 = vpop.f32.mrf.mxu0  ;;  %v4069_v36 = vld [vmem:[#allocation12_spill] sm:$0xff] }
 0x164   : > { %v2092_v3 = vadd.f32 %v3857_v61, %v2069_v13  ;;  %v1896_v14 = vadd.f32 %v1857_v18, %v1720_v44  ;;  %2158 = vrot.lane.b32.xlu1 %v2105_v31, %s3025_s27  ;;  %2160 = vrot.lane.b32.xlu0 %v2106_v4, %s3025_s27  ;;  %v2072_v50 = vadd.f32 %v2931_v53, %v1897_v57  ;;  %v2109_v56 = vmax.f32 %v2093_v48, 0.0  ;;  %v4071_v13 = vld [vmem:[#allocation15_spill] sm:$0xff] }
 0x165   : > { %v2908_v30 = vpop.f32.mrf.mxu1  ;;  %v2032_v27 = vpop.f32.mrf.mxu0 }
 0x166   : > { %v2108_v45 = vmax.f32 %v2092_v3, 0.0  ;;  %v1899_v33 = vadd.f32 %v2908_v30, %v1723_v43  ;;  %v2071_v11 = vadd.f32 %v2032_v27, %v1896_v14  ;;  %v2095_v39 = vadd.f32 %v3857_v61, %v2072_v50  ;;  %v4072_v43 = vld [vmem:[#allocation2_spill] sm:$0xff] }
 0x167   : > { %v1867_v7 = vpop.f32.mrf.mxu1  ;;  %v2934_v62 = vpop.f32.mrf.mxu0  ;;  %v4075_v50 = vld [vmem:[#allocation6_spill] sm:$0xff] }
 0x168   : > { %v2094_v52 = vadd.f32 %v3857_v61, %v2071_v11  ;;  %v1898_v35 = vadd.f32 %v1867_v7, %v1722_v32  ;;  %2162 = vrot.lane.b32.xlu1 %v2107_v10, %s3025_s27  ;;  %2164 = vrot.lane.b32.xlu0 %v2108_v45, %s3025_s27  ;;  %v2074_v6 = vadd.f32 %v2934_v62, %v1899_v33  ;;  %v2111_v22 = vmax.f32 %v2095_v39, 0.0  ;;  %v4074_v32 = vld [vmem:[#allocation5_spill] sm:$0xff]  ;;  %v4076_v10 = vld [vmem:[#allocation8_spill] sm:$0xff]  ;;  %v4077_v11 = vld [vmem:[#allocation10_spill] sm:$0xff] }
 0x169   : > { %v2911_v17 = vpop.f32.mrf.mxu1  ;;  %v2042_v42 = vpop.f32.mrf.mxu0 }
 0x16a   : > { %v2110_v29 = vmax.f32 %v2094_v52, 0.0  ;;  %v1901_v12 = vadd.f32 %v2911_v17, %v1725_v21  ;;  %v2073_v40 = vadd.f32 %v2042_v42, %v1898_v35  ;;  %v2097_v0 = vadd.f32 %v3857_v61, %v2074_v6  ;;  %v4078_v21 = vld [vmem:[#allocation11_spill] sm:$0xff]  ;;  %v4080_v17 = vld [vmem:[#allocation16_spill] sm:$0xff]  ;;  %v4081_v6 = vld [vmem:[#allocation17_spill] sm:$0xff] }
 0x16b   : > { %v1877_v54 = vpop.f32.mrf.mxu1  ;;  %v2937_v5 = vpop.f32.mrf.mxu0 }
 0x16c   : > { %v2096_v9 = vadd.f32 %v3857_v61, %v2073_v40  ;;  %v1900_v24 = vadd.f32 %v1877_v54, %v1724_v15  ;;  %2166 = vrot.lane.b32.xlu1 %v2109_v56, %s3025_s27  ;;  %2168 = vrot.lane.b32.xlu0 %v2110_v29, %s3025_s27  ;;  %v2076_v38 = vadd.f32 %v2937_v5, %v1901_v12  ;;  %v2113_v26 = vmax.f32 %v2097_v0, 0.0  ;;  %v4079_v15 = vld [vmem:[#allocation14_spill] sm:$0xff] }
 0x16d   : > { %v2052_v1 = vpop.f32.mrf.mxu0 }
 0x16e   : > { %v2112_v59 = vmax.f32 %v2096_v9, 0.0  ;;  %v2075_v19 = vadd.f32 %v2052_v1, %v1900_v24  ;;  %v2099_v23 = vadd.f32 %v3857_v61, %v2076_v38 }
 0x170   : > { %v2098_v20 = vadd.f32 %v3857_v61, %v2075_v19  ;;  %2170 = vrot.lane.b32.xlu1 %v2111_v22, %s3025_s27  ;;  %2172 = vrot.lane.b32.xlu0 %v2112_v59, %s3025_s27  ;;  %v2115_v16 = vmax.f32 %v2099_v23, 0.0  ;;  %v4068_v61 = vld [vmem:[#allocation9_spill] sm:$0xff] }
 0x172   : > { %v2114_v28 = vmax.f32 %v2098_v20, 0.0 }
 0x174   : > { %2174 = vrot.lane.b32.xlu1 %v2113_v26, %s3025_s27  ;;  %2176 = vrot.lane.b32.xlu0 %v2114_v28, %s3025_s27 }
 0x178   : > { %2178 = vrot.lane.b32.xlu1 %v2115_v16, %s3025_s27 }
 0x1c8   : > { %v2151_v2 = vpop.permute.xlu0 %2150 }
 0x1c9   : > { %v2197_v44 = vsel %vm430_vm2, %v4067_v51, %v2151_v2 }
 0x1cc   : > { %v2149_v49 = vpop.permute.xlu0 %2148 }
 0x1cd   : > { %v2196_v37 = vsel %vm430_vm2, %v4066_v47, %v2149_v49 }
 0x1ce   : > { %2212 = vxpose.xlu0.b32.start [1/16] (narrow) %v2196_v37, 8  ;;  %v2153_v8 = vpop.permute.xlu1 %2152 }
 0x1cf   : > { %v2198_v46 = vsel %vm430_vm2, %v4068_v61, %v2153_v8 }
 0x1d2   : > { %2213 = vxpose.xlu0.b32.cont [2/16] (narrow) %v2197_v44, 8  ;;  %v2155_v31 = vpop.permute.xlu1 %2154  ;;  %v2157_v60 = vpop.permute.xlu0 %2156 }
 0x1d3   : > { %v2199_v41 = vsel %vm430_vm2, %v4069_v36, %v2155_v31  ;;  %v2200_v4 = vsel %vm430_vm2, %v4070_v58, %v2157_v60 }
 0x1d6   : > { %2214 = vxpose.xlu0.b32.cont [3/16] (narrow) %v2198_v46, 8  ;;  %v2159_v57 = vpop.permute.xlu1 %2158  ;;  %v2161_v34 = vpop.permute.xlu0 %2160 }
 0x1d7   : > { %v2201_v55 = vsel %vm430_vm2, %v4071_v13, %v2159_v57  ;;  %v2202_v18 = vsel %vm430_vm2, %v4072_v43, %v2161_v34 }
 0x1da   : > { %2215 = vxpose.xlu0.b32.cont [4/16] (narrow) %v2199_v41, 8  ;;  %v2163_v53 = vpop.permute.xlu1 %2162  ;;  %v2165_v14 = vpop.permute.xlu0 %2164 }
 0x1db   : > { %v2203_v3 = vsel %vm430_vm2, %v4073_v25, %v2163_v53  ;;  %v2204_v63 = vsel %vm430_vm2, %v4074_v32, %v2165_v14 }
 0x1de   : > { %2216 = vxpose.xlu0.b32.cont [5/16] (narrow) %v2200_v4, 8  ;;  %v2167_v48 = vpop.permute.xlu1 %2166  ;;  %v2169_v27 = vpop.permute.xlu0 %2168 }
 0x1df   : > { %v2205_v30 = vsel %vm430_vm2, %v4075_v50, %v2167_v48  ;;  %v2206_v45 = vsel %vm430_vm2, %v4076_v10, %v2169_v27 }
 0x1e2   : > { %2217 = vxpose.xlu0.b32.cont [6/16] (narrow) %v2201_v55, 8  ;;  %v2171_v33 = vpop.permute.xlu1 %2170  ;;  %v2173_v62 = vpop.permute.xlu0 %2172 }
 0x1e3   : > { %v2207_v7 = vsel %vm430_vm2, %v4077_v11, %v2171_v33  ;;  %v2208_v52 = vsel %vm430_vm2, %v4078_v21, %v2173_v62 }
 0x1e6   : > { %2218 = vxpose.xlu0.b32.cont [7/16] (narrow) %v2202_v18, 8  ;;  %v2175_v35 = vpop.permute.xlu1 %2174  ;;  %v2177_v39 = vpop.permute.xlu0 %2176 }
 0x1e7   : > { %v2209_v56 = vsel %vm430_vm2, %v4079_v15, %v2175_v35  ;;  %v2210_v42 = vsel %vm430_vm2, %v4080_v17, %v2177_v39 }
 0x1ea   : > { %2219 = vxpose.xlu0.b32.cont [8/16] (narrow) %v2203_v3, 8  ;;  %v2179_v29 = vpop.permute.xlu1 %2178 }
 0x1eb   : > { %v2211_v12 = vsel %vm430_vm2, %v4081_v6, %v2179_v29 }
 0x1ee   : > { %2220 = vxpose.xlu0.b32.cont [9/16] (narrow) %v2204_v63, 8 }
 0x1f2   : > { %2221 = vxpose.xlu0.b32.cont [10/16] (narrow) %v2205_v30, 8 }
 0x1f6   : > { %2222 = vxpose.xlu0.b32.cont [11/16] (narrow) %v2206_v45, 8 }
 0x1fa   : > { %2223 = vxpose.xlu0.b32.cont [12/16] (narrow) %v2207_v7, 8 }
 0x1fe   : > { %2224 = vxpose.xlu0.b32.cont [13/16] (narrow) %v2208_v52, 8 }
 0x202   : > { %2225 = vxpose.xlu0.b32.cont [14/16] (narrow) %v2209_v56, 8 }
 0x206   : > { %2226 = vxpose.xlu0.b32.cont [15/16] (narrow) %v2210_v42, 8 }
 0x20a   : > { %2227 = vxpose.xlu0.b32.end [16/16] (narrow) %v2211_v12, 8 }
 0x24a   : > { %v2228_v40 = vpop.trf.xlu0 }
 0x24b   : > { %2244 = vst [vmem:[%s331_s8] sm:$0xff] %v2228_v40 }
 0x24c PF: > { %s15_s22 = sadd.s32 1, %s3023_s22   ;;  %s4082_s18 = smov %s3015_s20 }
 0x24d   : > { %p12_p8 = scmp.ge.s32.totalorder %s15_s22, 6   ;;  %s4083_s19 = smov %s3019_s21 }
 0x24e   : > { %s4084_s20 = smov %s4087_s23  ;;  %s4085_s21 = smov %s4091_s24 }
 0x24f   :  { %14 = sbr.rel (!%p12_p8) target bundleno = 3 (0x3), region = 84 }

</bundles_post_ra>
